<compile_context>
chip_gen: v6e
topology: v6e:2x2x1
jax: 0.10.0
libtpu: 0.0.40
codegen_flags: <defaults>
</compile_context>

<pallas_src>
import math

import jax
import jax.numpy as jnp
from jax import lax
from jax.experimental import pallas as pl
from jax.experimental.pallas import tpu as pltpu


_SELU_ALPHA = 1.6732632423543772
_SELU_SCALE = 1.0507009873554805


def _selu(x):
    neg = _SELU_ALPHA * (jnp.exp(jnp.minimum(x, 0.0)) - 1.0)
    return _SELU_SCALE * jnp.where(x > 0.0, x, neg)


def _dmon_pool_kernel(x_ref, adj_ref, w_ref, bias_ref, tmask_ref,
                      clustered_ref, adj_out_ref, spec_ref, clus_ref):
    # x_ref:     (B*Ns, F) bf16  node features of one subgraph, batches stacked
    #            (row index = b*Ns + n, n = t*space_nodes + s, same order as adj)
    # adj_ref:   (Ns, Ns)  bf16  dense subgraph adjacency (shared across batch)
    # w_ref:     (F, C) bf16   bias_ref: (1, C) f32   tmask_ref: (C, C) f32
    # clustered_ref: (B, C, F) f32   adj_out_ref: (B, C, C) f32
    # spec_ref/clus_ref: (1, 128) f32  (batch-mean losses, lane-broadcast scalars)
    B, C, _ = clustered_ref.shape
    ns = adj_ref.shape[0]

    x2d = x_ref[...]                        # (B*Ns, F) bf16
    adj = adj_ref[...]                      # (Ns, Ns)  bf16
    w = w_ref[...]                          # (F, C)    bf16
    bias = bias_ref[...]                    # (1, C)    f32
    tmask = tmask_ref[...]                  # (C, C)    f32

    # ---- cluster assignment for every (batch, node) row in one MXU matmul ------
    logits = jnp.dot(x2d, w, preferred_element_type=jnp.float32) + bias
    logits = logits - jnp.max(logits, axis=-1, keepdims=True)
    e = jnp.exp(logits)
    denom = jnp.sum(e, axis=-1, keepdims=True)
    s2d = e * pl.reciprocal(denom, approx=True)            # (B*Ns, C) f32

    # ---- graph-level quantities shared across the batch ------------------------
    adj_f32 = adj.astype(jnp.float32)
    deg = jnp.sum(adj_f32, axis=-1, keepdims=True)          # (Ns, 1)
    # 2*m, guarded against an all-zero adjacency (reference would emit NaN/inf).
    two_m = jnp.maximum(jnp.sum(deg), 1e-12)
    inv_two_m = 1.0 / two_m

    inv_b = 1.0 / float(B)
    sqrt_c_over_n = math.sqrt(float(C)) / float(ns)

    spec_acc = 0.0
    clus_acc = 0.0

    # The pooling matmuls are inherently per-sample (each batch element has its own
    # S), so unroll statically over the small batch; every op stays a plain 2-D dot.
    for bi in range(B):
        s_b = s2d[bi * ns:(bi + 1) * ns]                    # (Ns, C) f32
        x_b = x2d[bi * ns:(bi + 1) * ns]                    # (Ns, F) bf16
        s_bf = s_b.astype(jnp.bfloat16)

        # pooled node features: selu(S^T X)
        pooled = lax.dot_general(s_bf, x_b, (((0,), (0,)), ((), ())),
                                 preferred_element_type=jnp.float32)   # (C, F)
        clustered_ref[bi] = _selu(pooled).astype(clustered_ref.dtype)

        # pooled adjacency: (S^T A) S, then interconnected-timestep mask
        sa = lax.dot_general(s_bf, adj, (((0,), (0,)), ((), ())),
                             preferred_element_type=jnp.float32)       # (C, Ns)
        out_adj = jnp.dot(sa.astype(jnp.bfloat16), s_bf,
                          preferred_element_type=jnp.float32)          # (C, C)
        adj_out_ref[bi] = (out_adj * tmask).astype(adj_out_ref.dtype)

        # DMoN spectral loss: -(tr(S^T A S) - |S^T d|^2 / 2m) / 2m
        # trace taken as sum(sa * S^T); rank-1 normalizer matmul / eye mask removed.
        trace = jnp.sum(sa * s_b.T)
        ca = jnp.sum(s_b * deg, axis=0, keepdims=True)                 # (1, C)
        spec_acc = spec_acc + (-(trace - jnp.sum(ca * ca) * inv_two_m) * inv_two_m)

        # DMoN cluster loss: ||1^T S||_2 / Ns * sqrt(C) - 1
        csize = jnp.sum(s_b, axis=0, keepdims=True)                    # (1, C)
        clus_acc = clus_acc + (jnp.sqrt(jnp.sum(csize * csize)) * sqrt_c_over_n - 1.0)

    # batch-mean losses; one tiny store per subgraph (grid step).
    spec_ref[...] = (spec_acc * inv_b) * jnp.ones(spec_ref.shape, jnp.float32)
    clus_ref[...] = (clus_acc * inv_b) * jnp.ones(clus_ref.shape, jnp.float32)


def temporal_diff_pooling(x, adj, w, b, tmask, *, n_subgraphs, window,
                          n_nodes, space_nodes, compute_dtype=jnp.bfloat16):
    """x: (B, window*n_nodes, F), adj: (n_subgraphs, Ns, Ns) dense per-subgraph."""
    B, total_nodes, F = x.shape
    assert total_nodes == window * n_nodes
    Ns = window * space_nodes
    C = w.shape[1]
    assert C % space_nodes == 0

    # --- glue: split_to_subgraphs (contiguous spatial block per subgraph across the
    # temporal axis; node index = t * n_nodes + spatial).  The reshape is free and
    # the transpose fuses with the bf16 cast (one pass over x that bf16 needs anyway).
    x5 = x.reshape(B, window, n_subgraphs, space_nodes, F)
    subg = jnp.transpose(x5, (2, 0, 1, 3, 4)).reshape(
        n_subgraphs, B * Ns, F).astype(compute_dtype)
    adj_c = adj.astype(compute_dtype)
    w_c = w.astype(compute_dtype)
    b_f32 = b.astype(jnp.float32)
    tmask_f32 = tmask.astype(jnp.float32)

    # advisory cost hint for XLA's scheduler around the custom call
    flops = 2 * n_subgraphs * B * (Ns * F * C + C * Ns * F + C * Ns * Ns + C * Ns * C)
    bytes_accessed = (
        subg.size * subg.dtype.itemsize + adj_c.size * adj_c.dtype.itemsize
        + w_c.size * w_c.dtype.itemsize + b_f32.size * 4 + tmask_f32.size * 4
        + n_subgraphs * B * (C * F + C * C) * 4 + n_subgraphs * 2 * 128 * 4)
    cost = pl.CostEstimate(flops=flops,
                           transcendentals=n_subgraphs * B * Ns * C,
                           bytes_accessed=bytes_accessed)

    clustered, masked_adj, spec, clus = pl.pallas_call(
        _dmon_pool_kernel,
        out_shape=(
            jax.ShapeDtypeStruct((n_subgraphs, B, C, F), jnp.float32),
            jax.ShapeDtypeStruct((n_subgraphs, B, C, C), jnp.float32),
            jax.ShapeDtypeStruct((n_subgraphs, 1, 128), jnp.float32),
            jax.ShapeDtypeStruct((n_subgraphs, 1, 128), jnp.float32),
        ),
        grid_spec=pltpu.PrefetchScalarGridSpec(
            num_scalar_prefetch=0,
            grid=(n_subgraphs,),
            in_specs=[
                pl.BlockSpec((None, B * Ns, F), lambda g: (g, 0, 0)),
                pl.BlockSpec((None, Ns, Ns), lambda g: (g, 0, 0)),
                pl.BlockSpec((F, C), lambda g: (0, 0)),
                pl.BlockSpec((1, C), lambda g: (0, 0)),
                pl.BlockSpec((C, C), lambda g: (0, 0)),
            ],
            out_specs=(
                pl.BlockSpec((None, B, C, F), lambda g: (g, 0, 0, 0)),
                pl.BlockSpec((None, B, C, C), lambda g: (g, 0, 0, 0)),
                pl.BlockSpec((None, 1, 128), lambda g: (g, 0, 0)),
                pl.BlockSpec((None, 1, 128), lambda g: (g, 0, 0)),
            ),
        ),
        # Subgraph axis stays "parallel" so v7x's 2 TensorCores each take subgraphs.
        # VMEM: per-program working set is tiny here; re-budget (vmem_limit_bytes /
        # split the batch block) if Ns or B grow on v7x's 64 MiB VMEM.
        compiler_params=pltpu.CompilerParams(
            dimension_semantics=("parallel",)),
        cost_estimate=cost,
    )(subg, adj_c, w_c, b_f32, tmask_f32)

    # --- glue: torch.cat(clustered_adjs) over the subgraph axis (batch-major cat)
    clustered_adjs = masked_adj.reshape(n_subgraphs * B, C, C)

    # --- glue: restore_graph_shape:
    #   'c b (n s) f -> c b n s f' (s = space_nodes), then 'c b n s f -> b (n c s) f'
    n_groups = C // space_nodes
    g5 = clustered.reshape(n_subgraphs, B, n_groups, space_nodes, F)
    temporal_pooled = jnp.transpose(g5, (1, 2, 0, 3, 4)).reshape(
        B, n_groups * n_subgraphs * space_nodes, F)

    # --- glue: loss accumulation (loss_1 += spectral/n_subgraphs, loss_2 likewise);
    # the batch mean is already taken inside the kernel.
    loss_1 = jnp.sum(spec[:, 0, 0]) / n_subgraphs
    loss_2 = jnp.sum(clus[:, 0, 0]) / n_subgraphs

    return temporal_pooled, clustered_adjs, loss_1, loss_2


if __name__ == "__main__":
    # Small, module-consistent configuration.
    B = 2
    in_channels = 32
    window = 8
    n_nodes = 16
    n_subgraphs = 2
    reduction_ratio = 0.5
    space_nodes = n_nodes // n_subgraphs                              # 8
    Ns = window * space_nodes                                         # 64 nodes / subgraph
    C = math.ceil(window * space_nodes * reduction_ratio)             # 32 clusters

    key = jax.random.PRNGKey(0)
    kx, kw = jax.random.split(key)

    # temporal graph: (batch, window * n_nodes, features)
    x = jax.random.normal(kx, (B, window * n_nodes, in_channels), jnp.float32)

    # DMoNPooling MLP parameters: Linear(in_channels -> clusters), deterministic init
    w = jax.random.normal(kw, (in_channels, C), jnp.float32) / math.sqrt(in_channels)
    b = jnp.zeros((1, C), jnp.float32)

    # Synthetic per-subgraph dense adjacency (temporal arrow: node (t, j) -> (t+1, j)),
    # replacing k_hop_subgraph + to_dense_adj (see TODO at top of file).
    li = jnp.arange(Ns)
    arrow = ((li[None, :] - li[:, None]) == space_nodes).astype(jnp.float32)
    adj = jnp.tile(arrow[None], (n_subgraphs, 1, 1))                  # (n_subgraphs, Ns, Ns)

    # build_interconnected_timestep_mask: sum of super-diagonals at multiples of
    # space_nodes_in_subgraph over a (C, C) grid.
    rr = jnp.arange(C)[:, None]
    cc = jnp.arange(C)[None, :]
    dd = cc - rr
    tmask = ((dd >= 0) & (dd % space_nodes == 0)).astype(jnp.float32)

    out = temporal_diff_pooling(x, adj, w, b, tmask,
                                n_subgraphs=n_subgraphs, window=window,
                                n_nodes=n_nodes, space_nodes=space_nodes)
    out = jax.block_until_ready(out)
    temporal_pooled, clustered_adjs, loss_1, loss_2 = out

    assert temporal_pooled.shape == (B, C * n_subgraphs, in_channels)
    assert clustered_adjs.shape == (n_subgraphs * B, C, C)
    assert jnp.all(jnp.isfinite(temporal_pooled))
    assert jnp.all(jnp.isfinite(clustered_adjs))
    assert jnp.isfinite(loss_1) and jnp.isfinite(loss_2)

    print("KERNEL_OK")
</pallas_src>

<mosaic_0001>
module attributes {stable_mosaic.version = 11 : i64} {
  func.func @_dmon_pool_kernel(%arg0: i32, %arg1: memref<1x128x32xbf16, #tpu.memory_space<vmem>>, %arg2: memref<1x64x64xbf16, #tpu.memory_space<vmem>>, %arg3: memref<32x32xbf16, #tpu.memory_space<vmem>>, %arg4: memref<1x32xf32, #tpu.memory_space<vmem>>, %arg5: memref<32x32xf32, #tpu.memory_space<vmem>>, %arg6: memref<1x2x32x32xf32, #tpu.memory_space<vmem>>, %arg7: memref<1x2x32x32xf32, #tpu.memory_space<vmem>>, %arg8: memref<1x1x128xf32, #tpu.memory_space<vmem>>, %arg9: memref<1x1x128xf32, #tpu.memory_space<vmem>>) attributes {dimension_semantics = [#tpu.dimension_semantics<parallel>], iteration_bounds = array<i64: 2>, scalar_prefetch = 0 : i64, scratch_operands = 0 : i64, tpu.core_type = #tpu.core_type<tc>, window_params = [{transform_indices = @transform_0, window_bounds = array<i64: 1, 128, 32>}, {transform_indices = @transform_1, window_bounds = array<i64: 1, 64, 64>}, {pipeline_mode = #tpu.pipeline_mode<synchronous>, transform_indices = @transform_2, window_bounds = array<i64: 32, 32>}, {pipeline_mode = #tpu.pipeline_mode<synchronous>, transform_indices = @transform_3, window_bounds = array<i64: 1, 32>}, {pipeline_mode = #tpu.pipeline_mode<synchronous>, transform_indices = @transform_4, window_bounds = array<i64: 32, 32>}, {transform_indices = @transform_5, window_bounds = array<i64: 1, 2, 32, 32>}, {transform_indices = @transform_6, window_bounds = array<i64: 1, 2, 32, 32>}, {transform_indices = @transform_7, window_bounds = array<i64: 1, 1, 128>}, {transform_indices = @transform_8, window_bounds = array<i64: 1, 1, 128>}]} {
    %c0 = arith.constant 0 : index
    %c0_0 = arith.constant 0 : index
    %c0_1 = arith.constant 0 : index
    %0 = vector.load %arg1[%c0, %c0_0, %c0_1] : memref<1x128x32xbf16, #tpu.memory_space<vmem>>, vector<1x128x32xbf16>
    %1 = vector.shape_cast %0 : vector<1x128x32xbf16> to vector<128x32xbf16>
    %c0_2 = arith.constant 0 : index
    %c0_3 = arith.constant 0 : index
    %c0_4 = arith.constant 0 : index
    %2 = vector.load %arg2[%c0_2, %c0_3, %c0_4] : memref<1x64x64xbf16, #tpu.memory_space<vmem>>, vector<1x64x64xbf16>
    %3 = vector.shape_cast %2 : vector<1x64x64xbf16> to vector<64x64xbf16>
    %c0_5 = arith.constant 0 : index
    %c0_6 = arith.constant 0 : index
    %4 = vector.load %arg3[%c0_5, %c0_6] : memref<32x32xbf16, #tpu.memory_space<vmem>>, vector<32x32xbf16>
    %c0_7 = arith.constant 0 : index
    %c0_8 = arith.constant 0 : index
    %5 = vector.load %arg4[%c0_7, %c0_8] : memref<1x32xf32, #tpu.memory_space<vmem>>, vector<1x32xf32>
    %c0_9 = arith.constant 0 : index
    %c0_10 = arith.constant 0 : index
    %6 = vector.load %arg5[%c0_9, %c0_10] : memref<32x32xf32, #tpu.memory_space<vmem>>, vector<32x32xf32>
    %cst = arith.constant dense<0.000000e+00> : vector<128x32xf32>
    %7 = tpu.matmul %1, %4, %cst {dimension_numbers = #tpu.dot_dimension_numbers<[1], [0], [0], [1], [0, 0, 1, 1], [], []>} : vector<128x32xbf16>, vector<32x32xbf16>, vector<128x32xf32> -> vector<128x32xf32>
    %8 = vector.broadcast %5 : vector<1x32xf32> to vector<128x32xf32>
    %9 = arith.addf %7, %8 : vector<128x32xf32>
    %cst_11 = arith.constant dense<0xFF800000> : vector<128xf32>
    %10 = vector.multi_reduction <maximumf>, %9, %cst_11 [1] : vector<128x32xf32> to vector<128xf32>
    %11 = vector.shape_cast %10 : vector<128xf32> to vector<128x1xf32>
    %12 = vector.broadcast %11 : vector<128x1xf32> to vector<128x32xf32>
    %13 = arith.subf %9, %12 : vector<128x32xf32>
    %14 = math.exp %13 : vector<128x32xf32>
    %cst_12 = arith.constant dense<0.000000e+00> : vector<128xf32>
    %15 = vector.multi_reduction <add>, %14, %cst_12 [1] : vector<128x32xf32> to vector<128xf32>
    %16 = vector.shape_cast %15 : vector<128xf32> to vector<128x1xf32>
    %17 = tpu.reciprocal %16 {approx = true} : vector<128x1xf32> -> vector<128x1xf32>
    %18 = vector.broadcast %17 : vector<128x1xf32> to vector<128x32xf32>
    %19 = arith.mulf %14, %18 : vector<128x32xf32>
    %20 = arith.extf %3 : vector<64x64xbf16> to vector<64x64xf32>
    %cst_13 = arith.constant dense<0.000000e+00> : vector<64xf32>
    %21 = vector.multi_reduction <add>, %20, %cst_13 [1] : vector<64x64xf32> to vector<64xf32>
    %22 = vector.shape_cast %21 : vector<64xf32> to vector<64x1xf32>
    %23 = vector.shape_cast %22 : vector<64x1xf32> to vector<1x64x1xf32>
    %cst_14 = arith.constant dense<0.000000e+00> : vector<1xf32>
    %24 = vector.multi_reduction <add>, %23, %cst_14 [1, 2] : vector<1x64x1xf32> to vector<1xf32>
    %25 = vector.shape_cast %24 : vector<1xf32> to vector<1x1x1xf32>
    %26 = vector.extract %25[0, 0, 0] : f32 from vector<1x1x1xf32>
    %cst_15 = arith.constant 9.99999996E-13 : f32
    %27 = arith.maximumf %26, %cst_15 : f32
    %cst_16 = arith.constant 1.000000e+00 : f32
    %28 = arith.divf %cst_16, %27 : f32
    %29 = vector.extract_strided_slice %19 {offsets = [0, 0], sizes = [64, 32], strides = [1, 1]} : vector<128x32xf32> to vector<64x32xf32>
    %30 = vector.extract_strided_slice %1 {offsets = [0, 0], sizes = [64, 32], strides = [1, 1]} : vector<128x32xbf16> to vector<64x32xbf16>
    %31 = arith.truncf %29 : vector<64x32xf32> to vector<64x32xbf16>
    %cst_17 = arith.constant dense<0.000000e+00> : vector<32x32xf32>
    %32 = tpu.matmul %31, %30, %cst_17 {dimension_numbers = #tpu.dot_dimension_numbers<[0], [0], [1], [1], [0, 1, 1, 1], [], []>} : vector<64x32xbf16>, vector<64x32xbf16>, vector<32x32xf32> -> vector<32x32xf32>
    %cst_18 = arith.constant 0.000000e+00 : f32
    %33 = vector.broadcast %cst_18 : f32 to vector<32x32xf32>
    %34 = arith.minimumf %32, %33 : vector<32x32xf32>
    %35 = math.exp %34 : vector<32x32xf32>
    %cst_19 = arith.constant 1.000000e+00 : f32
    %36 = vector.broadcast %cst_19 : f32 to vector<32x32xf32>
    %37 = arith.subf %35, %36 : vector<32x32xf32>
    %cst_20 = arith.constant 1.67326319 : f32
    %38 = vector.broadcast %cst_20 : f32 to vector<32x32xf32>
    %39 = arith.mulf %38, %37 : vector<32x32xf32>
    %cst_21 = arith.constant 0.000000e+00 : f32
    %40 = vector.broadcast %cst_21 : f32 to vector<32x32xf32>
    %41 = arith.cmpf ogt, %32, %40 : vector<32x32xf32>
    %42 = arith.select %41, %32, %39 : vector<32x32xi1>, vector<32x32xf32>
    %cst_22 = arith.constant 1.05070102 : f32
    %43 = vector.broadcast %cst_22 : f32 to vector<32x32xf32>
    %44 = arith.mulf %43, %42 : vector<32x32xf32>
    %c0_23 = arith.constant 0 : index
    %c0_24 = arith.constant 0 : index
    %c0_25 = arith.constant 0 : index
    %c0_26 = arith.constant 0 : index
    %45 = vector.load %arg6[%c0_23, %c0_24, %c0_25, %c0_26] : memref<1x2x32x32xf32, #tpu.memory_space<vmem>>, vector<1x1x32x32xf32>
    %46 = vector.shape_cast %45 : vector<1x1x32x32xf32> to vector<32x32xf32>
    %47 = vector.shape_cast %44 : vector<32x32xf32> to vector<1x1x32x32xf32>
    tpu.vector_store %arg6[%c0_23, %c0_24, %c0_25, %c0_26], %47 {strides = array<i32>} : memref<1x2x32x32xf32, #tpu.memory_space<vmem>>, vector<1x1x32x32xf32>,
    %cst_27 = arith.constant dense<0.000000e+00> : vector<32x64xf32>
    %48 = tpu.matmul %31, %3, %cst_27 {dimension_numbers = #tpu.dot_dimension_numbers<[0], [0], [1], [1], [0, 1, 1, 1], [], []>} : vector<64x32xbf16>, vector<64x64xbf16>, vector<32x64xf32> -> vector<32x64xf32>
    %49 = arith.truncf %48 : vector<32x64xf32> to vector<32x64xbf16>
    %cst_28 = arith.constant dense<0.000000e+00> : vector<32x32xf32>
    %50 = tpu.matmul %49, %31, %cst_28 {dimension_numbers = #tpu.dot_dimension_numbers<[1], [0], [0], [1], [0, 0, 1, 1], [], []>} : vector<32x64xbf16>, vector<64x32xbf16>, vector<32x32xf32> -> vector<32x32xf32>
    %51 = arith.mulf %50, %6 : vector<32x32xf32>
    %c0_29 = arith.constant 0 : index
    %c0_30 = arith.constant 0 : index
    %c0_31 = arith.constant 0 : index
    %c0_32 = arith.constant 0 : index
    %52 = vector.load %arg7[%c0_29, %c0_30, %c0_31, %c0_32] : memref<1x2x32x32xf32, #tpu.memory_space<vmem>>, vector<1x1x32x32xf32>
    %53 = vector.shape_cast %52 : vector<1x1x32x32xf32> to vector<32x32xf32>
    %54 = vector.shape_cast %51 : vector<32x32xf32> to vector<1x1x32x32xf32>
    tpu.vector_store %arg7[%c0_29, %c0_30, %c0_31, %c0_32], %54 {strides = array<i32>} : memref<1x2x32x32xf32, #tpu.memory_space<vmem>>, vector<1x1x32x32xf32>,
    %55 = tpu.transpose %29, [1, 0] : vector<64x32xf32> -> vector<32x64xf32>
    %56 = arith.mulf %48, %55 : vector<32x64xf32>
    %57 = vector.shape_cast %56 : vector<32x64xf32> to vector<1x32x64xf32>
    %cst_33 = arith.constant dense<0.000000e+00> : vector<1xf32>
    %58 = vector.multi_reduction <add>, %57, %cst_33 [1, 2] : vector<1x32x64xf32> to vector<1xf32>
    %59 = vector.shape_cast %58 : vector<1xf32> to vector<1x1x1xf32>
    %60 = vector.extract %59[0, 0, 0] : f32 from vector<1x1x1xf32>
    %61 = vector.broadcast %22 : vector<64x1xf32> to vector<64x32xf32>
    %62 = arith.mulf %29, %61 : vector<64x32xf32>
    %cst_34 = arith.constant dense<0.000000e+00> : vector<32xf32>
    %63 = vector.multi_reduction <add>, %62, %cst_34 [0] : vector<64x32xf32> to vector<32xf32>
    %64 = vector.shape_cast %63 : vector<32xf32> to vector<1x32xf32>
    %65 = arith.mulf %64, %64 : vector<1x32xf32>
    %66 = vector.shape_cast %65 : vector<1x32xf32> to vector<1x1x32xf32>
    %cst_35 = arith.constant dense<0.000000e+00> : vector<1xf32>
    %67 = vector.multi_reduction <add>, %66, %cst_35 [1, 2] : vector<1x1x32xf32> to vector<1xf32>
    %68 = vector.shape_cast %67 : vector<1xf32> to vector<1x1x1xf32>
    %69 = vector.extract %68[0, 0, 0] : f32 from vector<1x1x1xf32>
    %70 = arith.mulf %69, %28 : f32
    %71 = arith.subf %60, %70 : f32
    %cst_36 = arith.constant 0.000000e+00 : f32
    %72 = arith.subf %cst_36, %71 : f32
    %73 = arith.mulf %72, %28 : f32
    %cst_37 = arith.constant 0.000000e+00 : f32
    %74 = arith.addf %cst_37, %73 : f32
    %cst_38 = arith.constant dense<0.000000e+00> : vector<32xf32>
    %75 = vector.multi_reduction <add>, %29, %cst_38 [0] : vector<64x32xf32> to vector<32xf32>
    %76 = vector.shape_cast %75 : vector<32xf32> to vector<1x32xf32>
    %77 = arith.mulf %76, %76 : vector<1x32xf32>
    %78 = vector.shape_cast %77 : vector<1x32xf32> to vector<1x1x32xf32>
    %cst_39 = arith.constant dense<0.000000e+00> : vector<1xf32>
    %79 = vector.multi_reduction <add>, %78, %cst_39 [1, 2] : vector<1x1x32xf32> to vector<1xf32>
    %80 = vector.shape_cast %79 : vector<1xf32> to vector<1x1x1xf32>
    %81 = vector.extract %80[0, 0, 0] : f32 from vector<1x1x1xf32>
    %82 = math.sqrt %81 : f32
    %cst_40 = arith.constant 0.0883883461 : f32
    %83 = arith.mulf %82, %cst_40 : f32
    %cst_41 = arith.constant 1.000000e+00 : f32
    %84 = arith.subf %83, %cst_41 : f32
    %cst_42 = arith.constant 0.000000e+00 : f32
    %85 = arith.addf %cst_42, %84 : f32
    %86 = vector.extract_strided_slice %19 {offsets = [64, 0], sizes = [64, 32], strides = [1, 1]} : vector<128x32xf32> to vector<64x32xf32>
    %87 = vector.extract_strided_slice %1 {offsets = [64, 0], sizes = [64, 32], strides = [1, 1]} : vector<128x32xbf16> to vector<64x32xbf16>
    %88 = arith.truncf %86 : vector<64x32xf32> to vector<64x32xbf16>
    %cst_43 = arith.constant dense<0.000000e+00> : vector<32x32xf32>
    %89 = tpu.matmul %88, %87, %cst_43 {dimension_numbers = #tpu.dot_dimension_numbers<[0], [0], [1], [1], [0, 1, 1, 1], [], []>} : vector<64x32xbf16>, vector<64x32xbf16>, vector<32x32xf32> -> vector<32x32xf32>
    %cst_44 = arith.constant 0.000000e+00 : f32
    %90 = vector.broadcast %cst_44 : f32 to vector<32x32xf32>
    %91 = arith.minimumf %89, %90 : vector<32x32xf32>
    %92 = math.exp %91 : vector<32x32xf32>
    %cst_45 = arith.constant 1.000000e+00 : f32
    %93 = vector.broadcast %cst_45 : f32 to vector<32x32xf32>
    %94 = arith.subf %92, %93 : vector<32x32xf32>
    %cst_46 = arith.constant 1.67326319 : f32
    %95 = vector.broadcast %cst_46 : f32 to vector<32x32xf32>
    %96 = arith.mulf %95, %94 : vector<32x32xf32>
    %cst_47 = arith.constant 0.000000e+00 : f32
    %97 = vector.broadcast %cst_47 : f32 to vector<32x32xf32>
    %98 = arith.cmpf ogt, %89, %97 : vector<32x32xf32>
    %99 = arith.select %98, %89, %96 : vector<32x32xi1>, vector<32x32xf32>
    %cst_48 = arith.constant 1.05070102 : f32
    %100 = vector.broadcast %cst_48 : f32 to vector<32x32xf32>
    %101 = arith.mulf %100, %99 : vector<32x32xf32>
    %c0_49 = arith.constant 0 : index
    %c1 = arith.constant 1 : index
    %c0_50 = arith.constant 0 : index
    %c0_51 = arith.constant 0 : index
    %102 = vector.load %arg6[%c0_49, %c1, %c0_50, %c0_51] : memref<1x2x32x32xf32, #tpu.memory_space<vmem>>, vector<1x1x32x32xf32>
    %103 = vector.shape_cast %102 : vector<1x1x32x32xf32> to vector<32x32xf32>
    %104 = vector.shape_cast %101 : vector<32x32xf32> to vector<1x1x32x32xf32>
    tpu.vector_store %arg6[%c0_49, %c1, %c0_50, %c0_51], %104 {strides = array<i32>} : memref<1x2x32x32xf32, #tpu.memory_space<vmem>>, vector<1x1x32x32xf32>,
    %cst_52 = arith.constant dense<0.000000e+00> : vector<32x64xf32>
    %105 = tpu.matmul %88, %3, %cst_52 {dimension_numbers = #tpu.dot_dimension_numbers<[0], [0], [1], [1], [0, 1, 1, 1], [], []>} : vector<64x32xbf16>, vector<64x64xbf16>, vector<32x64xf32> -> vector<32x64xf32>
    %106 = arith.truncf %105 : vector<32x64xf32> to vector<32x64xbf16>
    %cst_53 = arith.constant dense<0.000000e+00> : vector<32x32xf32>
    %107 = tpu.matmul %106, %88, %cst_53 {dimension_numbers = #tpu.dot_dimension_numbers<[1], [0], [0], [1], [0, 0, 1, 1], [], []>} : vector<32x64xbf16>, vector<64x32xbf16>, vector<32x32xf32> -> vector<32x32xf32>
    %108 = arith.mulf %107, %6 : vector<32x32xf32>
    %c0_54 = arith.constant 0 : index
    %c1_55 = arith.constant 1 : index
    %c0_56 = arith.constant 0 : index
    %c0_57 = arith.constant 0 : index
    %109 = vector.load %arg7[%c0_54, %c1_55, %c0_56, %c0_57] : memref<1x2x32x32xf32, #tpu.memory_space<vmem>>, vector<1x1x32x32xf32>
    %110 = vector.shape_cast %109 : vector<1x1x32x32xf32> to vector<32x32xf32>
    %111 = vector.shape_cast %108 : vector<32x32xf32> to vector<1x1x32x32xf32>
    tpu.vector_store %arg7[%c0_54, %c1_55, %c0_56, %c0_57], %111 {strides = array<i32>} : memref<1x2x32x32xf32, #tpu.memory_space<vmem>>, vector<1x1x32x32xf32>,
    %112 = tpu.transpose %86, [1, 0] : vector<64x32xf32> -> vector<32x64xf32>
    %113 = arith.mulf %105, %112 : vector<32x64xf32>
    %114 = vector.shape_cast %113 : vector<32x64xf32> to vector<1x32x64xf32>
    %cst_58 = arith.constant dense<0.000000e+00> : vector<1xf32>
    %115 = vector.multi_reduction <add>, %114, %cst_58 [1, 2] : vector<1x32x64xf32> to vector<1xf32>
    %116 = vector.shape_cast %115 : vector<1xf32> to vector<1x1x1xf32>
    %117 = vector.extract %116[0, 0, 0] : f32 from vector<1x1x1xf32>
    %118 = vector.broadcast %22 : vector<64x1xf32> to vector<64x32xf32>
    %119 = arith.mulf %86, %118 : vector<64x32xf32>
    %cst_59 = arith.constant dense<0.000000e+00> : vector<32xf32>
    %120 = vector.multi_reduction <add>, %119, %cst_59 [0] : vector<64x32xf32> to vector<32xf32>
    %121 = vector.shape_cast %120 : vector<32xf32> to vector<1x32xf32>
    %122 = arith.mulf %121, %121 : vector<1x32xf32>
    %123 = vector.shape_cast %122 : vector<1x32xf32> to vector<1x1x32xf32>
    %cst_60 = arith.constant dense<0.000000e+00> : vector<1xf32>
    %124 = vector.multi_reduction <add>, %123, %cst_60 [1, 2] : vector<1x1x32xf32> to vector<1xf32>
    %125 = vector.shape_cast %124 : vector<1xf32> to vector<1x1x1xf32>
    %126 = vector.extract %125[0, 0, 0] : f32 from vector<1x1x1xf32>
    %127 = arith.mulf %126, %28 : f32
    %128 = arith.subf %117, %127 : f32
    %cst_61 = arith.constant 0.000000e+00 : f32
    %129 = arith.subf %cst_61, %128 : f32
    %130 = arith.mulf %129, %28 : f32
    %131 = arith.addf %74, %130 : f32
    %cst_62 = arith.constant dense<0.000000e+00> : vector<32xf32>
    %132 = vector.multi_reduction <add>, %86, %cst_62 [0] : vector<64x32xf32> to vector<32xf32>
    %133 = vector.shape_cast %132 : vector<32xf32> to vector<1x32xf32>
    %134 = arith.mulf %133, %133 : vector<1x32xf32>
    %135 = vector.shape_cast %134 : vector<1x32xf32> to vector<1x1x32xf32>
    %cst_63 = arith.constant dense<0.000000e+00> : vector<1xf32>
    %136 = vector.multi_reduction <add>, %135, %cst_63 [1, 2] : vector<1x1x32xf32> to vector<1xf32>
    %137 = vector.shape_cast %136 : vector<1xf32> to vector<1x1x1xf32>
    %138 = vector.extract %137[0, 0, 0] : f32 from vector<1x1x1xf32>
    %139 = math.sqrt %138 : f32
    %cst_64 = arith.constant 0.0883883461 : f32
    %140 = arith.mulf %139, %cst_64 : f32
    %cst_65 = arith.constant 1.000000e+00 : f32
    %141 = arith.subf %140, %cst_65 : f32
    %142 = arith.addf %85, %141 : f32
    %cst_66 = arith.constant 5.000000e-01 : f32
    %143 = arith.mulf %131, %cst_66 : f32
    %cst_67 = arith.constant 1.000000e+00 : f32
    %144 = vector.broadcast %cst_67 : f32 to vector<1x128xf32>
    %145 = vector.broadcast %143 : f32 to vector<1x128xf32>
    %146 = arith.mulf %145, %144 : vector<1x128xf32>
    %c0_68 = arith.constant 0 : index
    %c0_69 = arith.constant 0 : index
    %c0_70 = arith.constant 0 : index
    %147 = vector.load %arg8[%c0_68, %c0_69, %c0_70] : memref<1x1x128xf32, #tpu.memory_space<vmem>>, vector<1x1x128xf32>
    %148 = vector.shape_cast %147 : vector<1x1x128xf32> to vector<1x128xf32>
    %149 = vector.shape_cast %146 : vector<1x128xf32> to vector<1x1x128xf32>
    tpu.vector_store %arg8[%c0_68, %c0_69, %c0_70], %149 {strides = array<i32>} : memref<1x1x128xf32, #tpu.memory_space<vmem>>, vector<1x1x128xf32>,
    %cst_71 = arith.constant 5.000000e-01 : f32
    %150 = arith.mulf %142, %cst_71 : f32
    %cst_72 = arith.constant 1.000000e+00 : f32
    %151 = vector.broadcast %cst_72 : f32 to vector<1x128xf32>
    %152 = vector.broadcast %150 : f32 to vector<1x128xf32>
    %153 = arith.mulf %152, %151 : vector<1x128xf32>
    %c0_73 = arith.constant 0 : index
    %c0_74 = arith.constant 0 : index
    %c0_75 = arith.constant 0 : index
    %154 = vector.load %arg9[%c0_73, %c0_74, %c0_75] : memref<1x1x128xf32, #tpu.memory_space<vmem>>, vector<1x1x128xf32>
    %155 = vector.shape_cast %154 : vector<1x1x128xf32> to vector<1x128xf32>
    %156 = vector.shape_cast %153 : vector<1x128xf32> to vector<1x1x128xf32>
    tpu.vector_store %arg9[%c0_73, %c0_74, %c0_75], %156 {strides = array<i32>} : memref<1x1x128xf32, #tpu.memory_space<vmem>>, vector<1x1x128xf32>,
    return
  }
  func.func @transform_0(%arg0: i32) -> (i32, i32, i32) {
    %c0_i32 = arith.constant 0 : i32
    %c0_i32_0 = arith.constant 0 : i32
    %c0_i32_1 = arith.constant 0 : i32
    return %arg0, %c0_i32, %c0_i32_0 : i32, i32, i32
  }
  func.func @transform_1(%arg0: i32) -> (i32, i32, i32) {
    %c0_i32 = arith.constant 0 : i32
    %c0_i32_0 = arith.constant 0 : i32
    %c0_i32_1 = arith.constant 0 : i32
    return %arg0, %c0_i32, %c0_i32_0 : i32, i32, i32
  }
  func.func @transform_2(%arg0: i32) -> (i32, i32) {
    %c0_i32 = arith.constant 0 : i32
    %c0_i32_0 = arith.constant 0 : i32
    %c0_i32_1 = arith.constant 0 : i32
    return %c0_i32, %c0_i32_0 : i32, i32
  }
  func.func @transform_3(%arg0: i32) -> (i32, i32) {
    %c0_i32 = arith.constant 0 : i32
    %c0_i32_0 = arith.constant 0 : i32
    %c0_i32_1 = arith.constant 0 : i32
    return %c0_i32, %c0_i32_0 : i32, i32
  }
  func.func @transform_4(%arg0: i32) -> (i32, i32) {
    %c0_i32 = arith.constant 0 : i32
    %c0_i32_0 = arith.constant 0 : i32
    %c0_i32_1 = arith.constant 0 : i32
    return %c0_i32, %c0_i32_0 : i32, i32
  }
  func.func @transform_5(%arg0: i32) -> (i32, i32, i32, i32) {
    %c0_i32 = arith.constant 0 : i32
    %c0_i32_0 = arith.constant 0 : i32
    %c0_i32_1 = arith.constant 0 : i32
    %c0_i32_2 = arith.constant 0 : i32
    return %arg0, %c0_i32, %c0_i32_0, %c0_i32_1 : i32, i32, i32, i32
  }
  func.func @transform_6(%arg0: i32) -> (i32, i32, i32, i32) {
    %c0_i32 = arith.constant 0 : i32
    %c0_i32_0 = arith.constant 0 : i32
    %c0_i32_1 = arith.constant 0 : i32
    %c0_i32_2 = arith.constant 0 : i32
    return %arg0, %c0_i32, %c0_i32_0, %c0_i32_1 : i32, i32, i32, i32
  }
  func.func @transform_7(%arg0: i32) -> (i32, i32, i32) {
    %c0_i32 = arith.constant 0 : i32
    %c0_i32_0 = arith.constant 0 : i32
    %c0_i32_1 = arith.constant 0 : i32
    return %arg0, %c0_i32, %c0_i32_0 : i32, i32, i32
  }
  func.func @transform_8(%arg0: i32) -> (i32, i32, i32) {
    %c0_i32 = arith.constant 0 : i32
    %c0_i32_0 = arith.constant 0 : i32
    %c0_i32_1 = arith.constant 0 : i32
    return %arg0, %c0_i32, %c0_i32_0 : i32, i32, i32
  }
}

</mosaic_0001>

<bundles_post_ra>
// kernel: tpu_custom_call.1
= control target key start
LH: loop header
LB: loop body
LE: loop exit
PB: predicated region body
PF: predicated region fallthrough
CT: control target
= control target key end

     0   :  { %s3100_s0 = inlined_call_operand.vmem [shape: bf16[2,128,32], index: 0, kind: input, shape index: {}]   ;;  %s3101_s1 = inlined_call_operand.vmem [shape: bf16[2,64,64], index: 1, kind: input, shape index: {}]   ;;  %s3102_s2 = inlined_call_operand.vmem [shape: bf16[32,32], index: 2, kind: input, shape index: {}]   ;;  %s3103_s3 = inlined_call_operand.vmem [shape: f32[1,32], index: 3, kind: input, shape index: {}]   ;;  %s3104_s4 = inlined_call_operand.vmem [shape: f32[32,32], index: 4, kind: input, shape index: {}]   ;;  %s3105_s5 = inlined_call_operand.hbm [shape: f32[2,2,32,32], index: 5, kind: output, shape index: {0}]   ;;  %s3106_s6 = inlined_call_operand.hbm [shape: f32[2,2,32,32], index: 6, kind: output, shape index: {1}]   ;;  %s3107_s7 = inlined_call_operand.hbm [shape: f32[2,1,128], index: 7, kind: output, shape index: {2}]   ;;  %s3108_s8 = inlined_call_operand.hbm [shape: f32[2,1,128], index: 8, kind: output, shape index: {3}]  }
   0x1   :  { %3113 = sst [smem:[#allocation15_spill]] %s3100_s0 }
   0x2   :  { %3114 = sst [smem:[#allocation16_spill]] %s3101_s1 }
   0x3   :  { %3115 = sst [smem:[#allocation17_spill]] %s3102_s2 }
   0x4   :  { %3116 = sst [smem:[#allocation18_spill]] %s3103_s3 }
   0x5   :  { %3117 = sst [smem:[#allocation19_spill]] %s3104_s4 }
   0x6   :  { %3118 = sst [smem:[#allocation20_spill]] %s3105_s5 }
   0x7   :  { %3119 = sst [smem:[#allocation21_spill]] %s3106_s6 }
   0x8   :  { %14 = vsyncpa [#allocation3], 0 }
   0x9   :  { %16 = vsyncpa [#allocation3 + $0x1], 0 }
   0xa   :  { %17 = vsyncpa [#allocation5], 0 }
   0xb   :  { %19 = vsyncpa [#allocation5 + $0x1], 0 }
   0xc   :  { %20 = vsyncpa [#allocation8], 0 }
   0xd   :  { %22 = vsyncpa [#allocation8 + $0x1], 0  ;;  %s2401_s27 = smov 0   ;;  %s2403_s28 = smov 0  }
   0xe   :  { %s2405_s29 = smov 0   ;;  %s2407_s30 = smov 0  }
   0xf LB: > { %3120 = sst [smem:[#allocation12_spill]] %s2339_s28  ;;  %s2422_s9 = sadd.s32 4294967295, %s2347_s30   ;;  %s2347_s30 = sphi %s2407_s30, %s3137_s30   ;;  %s2343_s29 = sphi %s2405_s29, %s3136_s29   ;;  %s2339_s28 = sphi %s2403_s28, %s3135_s28   ;;  %s2335_s27 = sphi %s2401_s27, %s3134_s27  }
  0x10   : > { %3121 = sst [smem:[#allocation13_spill]] %s2343_s29  ;;  %s3109_s10 = sadd.s32 4294967294, %s2347_s30  }
  0x11   : > { %s2426_s11 = sadd.s32 1, %s2347_s30   ;;  %s150_s12 = sadd.s32 1, %s2343_s29 }
  0x12   : > { %s147_s13 = ssub.s32 %s2347_s30, %s2426_s11  ;;  %p160_p0 = scmp.ne.s32.totalorder %s2343_s29, %s2339_s28 }
  0x13   : > { %p148_p1 = scmp.eq.s32.totalorder %s147_s13, 0  ;;  %p161_p2 = scmp.eq.s32.totalorder %s2422_s9, 1 }
  0x14   : > { %p166_p3 = scmp.ne.s32.totalorder %s2339_s28, %s2335_s27  ;;  %p167_p4 = scmp.eq.s32.totalorder %s3109_s10, 1 }
  0x15   : > { %s2439_s14 = scalar_select %p148_p1, %s2343_s29, %s150_s12  }
  0x16   : > { %p2441_p5 = por %p161_p2, %p160_p0  ;;  %p2445_p6 = por %p167_p4, %p166_p3 }
  0x17   : > { %3122 = sst [smem:[#allocation14_spill]] %s2439_s14  ;;  %p1806_p7 = scmp.ge.s32.totalorder %s2347_s30, 1 }
  0x18   : > { %p288_p8 = scmp.lt.s32.totalorder %s2347_s30, 3 }
  0x1a   : > { %p289_p9 = pnand %p1806_p7, %p288_p8 }
  0x1b   : > { %s3125_s2 = sld [smem:[#allocation17_spill]] (!%p289_p9)  ;;  %p340_p10 = scmp.lt.s32.totalorder (!%p289_p9), %s2422_s9, 1 }
  0x1c   : > { %292 = sbr.rel (%p289_p9) target bundleno = 1459 (0x5b3), region = 40  ;;  %s3126_s0 = sld [smem:[#allocation15_spill]] (!%p289_p9) }
  0x1d   : > { %s3127_s3 = sld [smem:[#allocation18_spill]] (!%p289_p9)  ;;  %s2832_s20 = sand.u32 (!%p289_p9), 1, %s2339_s28  }
  0x1e   : > { %s3128_s1 = sld [smem:[#allocation16_spill]] (!%p289_p9)  ;;  %s2349_s24 = smov (!%p289_p9), 1e-12  }
  0x1f   : > { %s3129_s4 = sld [smem:[#allocation19_spill]] (!%p289_p9) }
  0x20   : > { %s3130_s6 = sld [smem:[#allocation21_spill]] (!%p289_p9) }
  0x21   : > { %v2097_v0 = vld [vmem:[%s3125_s2 + $0x8] sm:$0xff]   ;;  %v2098_v1 = vld [vmem:[%s3125_s2] sm:$0xff]   ;;  %s2459_s21 = scalar_select %p340_p10, %s2422_s9, 1  ;;  %vm442_vm0 = vcmask 261120   ;;  %vm748_vm1 = vcmask 523264   ;;  %vm773_vm2 = vcmask 7168  }
  0x22   : > { %1926 = vmatprep.subr.bf16.mxu0 %v2097_v0  ;;  %vm1137_vm3 = vcmask 253952   ;;  %s3131_s5 = sld [smem:[#allocation20_spill]] }
  0x23   : > { %1927 = vmatpush3.bf16.msra.mxu0 %v2097_v0  ;;  %s1876_s22 = sshll.u32 %s2459_s21, 6  ;;  %v2488_v10 = vld [vmem:[%s3127_s3] ss:$0 sm:$0xff]  ;;  %s1877_s13 = sshll.u32 %s2459_s21, 5 }
  0x24   : > { %1928 = vmatprep.subr.bf16.mxu0 %v2098_v1  ;;  %s344_s25 = scalar_lea.vmem %s3126_s0, %s1876_s22  ;;  %s2579_s19 = scalar_lea.vmem %s3128_s1, %s1877_s13 }
  0x25   : > { %v2099_v2 = vld [vmem:[%s344_s25] sm:$0xff]   ;;  %v2100_v3 = vld [vmem:[%s344_s25 + $0x8] sm:$0xff]   ;;  %v2101_v4 = vld [vmem:[%s344_s25 + $0x10] sm:$0xff]   ;;  %s1807_s21 = sshll.u32 %s2832_s20, 6 }
  0x26   : > { %1930 = vmatprep.mubr.msk.bf16.mxu0 %vm442_vm0, %v2099_v2  ;;  %v2102_v5 = vld [vmem:[%s344_s25 + $0x18] sm:$0xff]   ;;  %v2468_v6 = vld [vmem:[%s344_s25 + $0x20] sm:$0xff]   ;;  %v2473_v7 = vld [vmem:[%s344_s25 + $0x28] sm:$0xff]   ;;  %s2838_s22 = scalar_lea.vmem [#allocation2], %s1807_s21 }
  0x27   : > { %1929 = vmatpush3.bf16.msra.mxu0 %v2098_v1  ;;  %1946 = vmatprep.subr.bf16.mxu1 %v2102_v5  ;;  %v2475_v8 = vld [vmem:[%s344_s25 + $0x30] sm:$0xff]   ;;  %v2481_v9 = vld [vmem:[%s344_s25 + $0x38] sm:$0xff]  }
  0x28   : > { %1947 = vmatpush3.bf16.msra.mxu1 %v2102_v5 }
  0x29   : > { %1948 = vmatprep.subr.bf16.mxu1 %v2101_v4 }
  0x2a   : > { %1931 = vmatmul.mubr.msk.bf16.vlgmr.msra.gmra.mxu0 %vm442_vm0, %v2100_v3 }
  0x2b   : > { %1934 = vmatprep.mubr.msk.bf16.mxu0 %vm442_vm0, %v2101_v4 }
  0x2c   : > { %1949 = vmatpush3.bf16.msra.mxu1 %v2101_v4 }
  0x2d   : > { %1950 = vmatprep.subr.bf16.mxu1 %v2100_v3 }
  0x30   : > { %1951 = vmatpush3.bf16.msra.mxu1 %v2100_v3 }
  0x31   : > { %1952 = vmatprep.subr.bf16.mxu1 %v2099_v2 }
  0x32   : > { %1935 = vmatmul.mubr.msk.bf16.gmra.mxu0 %vm442_vm0, %v2102_v5 }
  0x33   : > { %1938 = vmatprep.mubr.msk.bf16.mxu0 %vm442_vm0, %v2468_v6 }
  0x34   : > { %1953 = vmatpush3.bf16.msra.mxu1 %v2099_v2 }
  0x3a   : > { %1939 = vmatmul.mubr.msk.bf16.gmra.mxu0 %vm442_vm0, %v2473_v7 }
  0x3b   : > { %1942 = vmatprep.mubr.msk.bf16.mxu0 %vm442_vm0, %v2475_v8 }
  0x42   : > { %1943 = vmatmul.mubr.msk.bf16.gmra.mxu0 %vm442_vm0, %v2481_v9 }
  0xea   : > { %v1932_v11 = vpop.f32.mrf.mxu0 }
  0xeb   : > { %v510_v12 = vadd.f32 %v1932_v11, %v2488_v10 }
  0xec   : > { %v501_v13 = vpop.f32.mrf.mxu0 }
  0xed   : > { %v502_v14 = vadd.f32 %v2488_v10, %v501_v13  ;;  %v570_v15 = vsel %vm442_vm0, %v510_v12, -inf }
  0xee   : > { %571 = vmax.xlane.f32.xlu1 %v570_v15  ;;  %v1933_v16 = vpop.f32.mrf.mxu0 }
  0xef   : > { %v513_v17 = vadd.f32 %v1933_v16, %v2488_v10  ;;  %v564_v18 = vsel %vm442_vm0, %v502_v14, -inf }
  0xf0   : > { %v504_v19 = vpop.f32.mrf.mxu0  ;;  %565 = vmax.xlane.f32.xlu0 %v564_v18 }
  0xf1   : > { %v505_v20 = vadd.f32 %v2488_v10, %v504_v19  ;;  %v573_v21 = vsel %vm442_vm0, %v513_v17, -inf }
  0xf2   : > { %574 = vmax.xlane.f32.xlu1 %v573_v21  ;;  %v1936_v22 = vpop.f32.mrf.mxu0 }
  0xf3   : > { %v567_v23 = vsel %vm442_vm0, %v505_v20, -inf  ;;  %v526_v27 = vadd.f32 %v1936_v22, %v2488_v10 }
  0xf4   : > { %v517_v24 = vpop.f32.mrf.mxu0  ;;  %568 = vmax.xlane.f32.xlu0 %v567_v23 }
  0xf5   : > { %v518_v25 = vadd.f32 %v2488_v10, %v517_v24  ;;  %v582_v33 = vsel %vm442_vm0, %v526_v27, -inf }
  0xf6   : > { %v1937_v26 = vpop.f32.mrf.mxu0 }
  0xf7   : > { %v576_v28 = vsel %vm442_vm0, %v518_v25, -inf  ;;  %v529_v31 = vadd.f32 %v1937_v26, %v2488_v10 }
  0xf8   : > { %v520_v29 = vpop.f32.mrf.mxu0  ;;  %577 = vmax.xlane.f32.xlu0 %v576_v28 }
  0xf9   : > { %v521_v30 = vadd.f32 %v2488_v10, %v520_v29  ;;  %v585_v34 = vsel %vm442_vm0, %v529_v31, -inf }
  0xfa   : > { %v1940_v2 = vpop.f32.mrf.mxu0 }
  0xfb   : > { %v579_v32 = vsel %vm442_vm0, %v521_v30, -inf  ;;  %v2544_v24 = vadd.f32 %v1940_v2, %v2488_v10 }
  0xfc   : > { %580 = vmax.xlane.f32.xlu1 %v579_v32  ;;  %583 = vmax.xlane.f32.xlu0 %v582_v33  ;;  %v533_v11 = vpop.f32.mrf.mxu0 }
  0xfd   : > { %v534_v18 = vadd.f32 %v2488_v10, %v533_v11  ;;  %v594_v28 = vsel %vm442_vm0, %v2544_v24, -inf }
  0xfe   : > { %v1941_v15 = vpop.f32.mrf.mxu0 }
  0xff   : > { %v588_v22 = vsel %vm442_vm0, %v534_v18, -inf }
 0x100   : > { %586 = vmax.xlane.f32.xlu1 %v585_v34 }
 0x177   : > { %v572_v35 = vpop.xlane.xlu1 %571 }
 0x178   : > { %v614_v36 = vsub.f32 %v510_v12, %v572_v35 }
 0x179   : > { %v566_v37 = vpop.xlane.xlu0 %565 }
 0x17a   : > { %v632_v38 = vmul.f32 1.442695, %v614_v36  ;;  %v612_v39 = vsub.f32 %v502_v14, %v566_v37 }
 0x17b   : > { %v575_v40 = vpop.xlane.xlu1 %574 }
 0x17c   : > { %2115 = vpow2.f32 %v632_v38  ;;  %v628_v41 = vmul.f32 1.442695, %v612_v39  ;;  %v615_v42 = vsub.f32 %v513_v17, %v575_v40  ;;  %v2582_v40 = vld [vmem:[%s2579_s19 + $0x18] sm:$0xff]  }
 0x17d   : > { %v569_v43 = vpop.xlane.xlu0 %568  ;;  %1958 = vmatprep.subr.bf16.mxu1 %v2582_v40 }
 0x17e   : > { %2117 = vpow2.f32 %v628_v41  ;;  %v634_v44 = vmul.f32 1.442695, %v615_v42  ;;  %v613_v45 = vsub.f32 %v505_v20, %v569_v43  ;;  %v536_v20 = vpop.f32.mrf.mxu0 }
 0x17f   : > { %v2540_v21 = vadd.f32 %v2488_v10, %v536_v20 }
 0x180   : > { %2119 = vpow2.f32 %v634_v44  ;;  %v630_v46 = vmul.f32 1.442695, %v613_v45  ;;  %v1944_v23 = vpop.f32.mrf.mxu0 }
 0x181   : > { %v578_v47 = vpop.xlane.xlu0 %577  ;;  %v2564_v35 = vadd.f32 %v1944_v23, %v2488_v10 }
 0x182   : > { %2121 = vpow2.f32 %v630_v46  ;;  %v616_v48 = vsub.f32 %v518_v25, %v578_v47  ;;  %v591_v25 = vsel %vm442_vm0, %v2540_v21, -inf  ;;  %v549_v26 = vpop.f32.mrf.mxu0 }
 0x183   : > { %v606_v38 = vsel %vm442_vm0, %v2564_v35, -inf }
 0x184   : > { %v636_v49 = vmul.f32 1.442695, %v616_v48  ;;  %v1945_v29 = vpop.f32.mrf.mxu0 }
 0x185   : > { %v581_v50 = vpop.xlane.xlu1 %580  ;;  %v584_v51 = vpop.xlane.xlu0 %583  ;;  %v2569_v37 = vadd.f32 %v1945_v29, %v2488_v10 }
 0x186   : > { %2123 = vpow2.f32 %v636_v49  ;;  %v617_v52 = vsub.f32 %v521_v30, %v581_v50  ;;  %v618_v53 = vsub.f32 %v526_v27, %v584_v51  ;;  %v2549_v27 = vadd.f32 %v1941_v15, %v2488_v10  ;;  %v552_v32 = vpop.f32.mrf.mxu0 }
 0x187   : > { %v2554_v30 = vadd.f32 %v2488_v10, %v549_v26  ;;  %v2559_v33 = vadd.f32 %v2488_v10, %v552_v32  ;;  %v609_v39 = vsel %vm442_vm0, %v2569_v37, -inf }
 0x188   : > { %v638_v54 = vmul.f32 1.442695, %v617_v52  ;;  %v640_v55 = vmul.f32 1.442695, %v618_v53 }
 0x189   : > { %v2506_v56 = vpop.eup %2115  ;;  %v587_v57 = vpop.xlane.xlu1 %586  ;;  %v600_v34 = vsel %vm442_vm0, %v2554_v30, -inf  ;;  %v603_v36 = vsel %vm442_vm0, %v2559_v33, -inf }
 0x18a   : > { %2125 = vpow2.f32 %v638_v54  ;;  %v619_v58 = vsub.f32 %v529_v31, %v587_v57  ;;  %v666_v59 = vsel %vm442_vm0, %v2506_v56, 0.0  ;;  %v597_v31 = vsel %vm442_vm0, %v2549_v27, -inf }
 0x18b   : > { %v2510_v60 = vpop.eup %2117  ;;  %2127 = vpow2.f32 %v640_v55  ;;  %667 = vadd.xlane.f32.xlu0 %v666_v59 }
 0x18c   : > { %v642_v61 = vmul.f32 1.442695, %v619_v58  ;;  %v660_v0 = vsel %vm442_vm0, %v2510_v60, 0.0 }
 0x18d   : > { %v2512_v62 = vpop.eup %2119 }
 0x18e   : > { %2129 = vpow2.f32 %v642_v61  ;;  %v669_v63 = vsel %vm442_vm0, %v2512_v62, 0.0 }
 0x18f   : > { %v2518_v1 = vpop.eup %2121  ;;  %670 = vadd.xlane.f32.xlu1 %v669_v63  ;;  %661 = vadd.xlane.f32.xlu0 %v660_v0 }
 0x190   : > { %v663_v3 = vsel %vm442_vm0, %v2518_v1, 0.0 }
 0x193   : > { %v2522_v4 = vpop.eup %2123  ;;  %664 = vadd.xlane.f32.xlu1 %v663_v3 }
 0x194   : > { %v672_v5 = vsel %vm442_vm0, %v2522_v4, 0.0 }
 0x195   : > { %673 = vadd.xlane.f32.xlu0 %v672_v5 }
 0x197   : > { %v2526_v12 = vpop.eup %2125 }
 0x198   : > { %v2528_v13 = vpop.eup %2127  ;;  %v675_v14 = vsel %vm442_vm0, %v2526_v12, 0.0 }
 0x199   : > { %676 = vadd.xlane.f32.xlu1 %v675_v14  ;;  %v678_v16 = vsel %vm442_vm0, %v2528_v13, 0.0 }
 0x19a   : > { %679 = vadd.xlane.f32.xlu0 %v678_v16 }
 0x19b   : > { %v2534_v17 = vpop.eup %2129 }
 0x19c   : > { %v681_v19 = vsel %vm442_vm0, %v2534_v17, 0.0 }
 0x19d   : > { %682 = vadd.xlane.f32.xlu1 %v681_v19 }
 0x1a1   : > { %589 = vmax.xlane.f32.xlu1 %v588_v22 }
 0x1a5   : > { %592 = vmax.xlane.f32.xlu1 %v591_v25 }
 0x1a9   : > { %595 = vmax.xlane.f32.xlu1 %v594_v28 }
 0x1ad   : > { %598 = vmax.xlane.f32.xlu1 %v597_v31 }
 0x1b1   : > { %601 = vmax.xlane.f32.xlu1 %v600_v34 }
 0x1b5   : > { %604 = vmax.xlane.f32.xlu1 %v603_v36 }
 0x1b9   : > { %607 = vmax.xlane.f32.xlu1 %v606_v38 }
 0x1bd   : > { %610 = vmax.xlane.f32.xlu1 %v609_v39 }
 0x214   : > { %v668_v10 = vpop.xlane.xlu0 %667 }
 0x218   : > { %v671_v41 = vpop.xlane.xlu1 %670  ;;  %v662_v42 = vpop.xlane.xlu0 %661 }
 0x219   : > { %2131 = vrcp.f32 %v662_v42 }
 0x21a   : > { %2133 = vrcp.f32 %v671_v41 }
 0x21c   : > { %v665_v43 = vpop.xlane.xlu1 %664 }
 0x21d   : > { %2135 = vrcp.f32 %v665_v43 }
 0x21e   : > { %v674_v44 = vpop.xlane.xlu0 %673  ;;  %2137 = vrcp.f32 %v668_v10 }
 0x21f   : > { %2139 = vrcp.f32 %v674_v44 }
 0x222   : > { %v677_v45 = vpop.xlane.xlu1 %676 }
 0x223   : > { %2141 = vrcp.f32 %v677_v45  ;;  %v680_v46 = vpop.xlane.xlu0 %679 }
 0x224   : > { %2143 = vrcp.f32 %v680_v46  ;;  %v2652_v46 = vld [vmem:[%s2579_s19] sm:$0xff]  }
 0x226   : > { %v683_v47 = vpop.xlane.xlu1 %682  ;;  %v2132_v48 = vpop.eup %2131 }
 0x227   : > { %2145 = vrcp.f32 %v683_v47  ;;  %v2134_v49 = vpop.eup %2133  ;;  %v2586_v53 = vmul.f32 %v2132_v48, %v2510_v60  ;;  %v740_v48 = vunpack.c.l.bf16 %v2652_v46 }
 0x228   : > { %v2594_v59 = vmul.f32 %v2134_v49, %v2512_v62 }
 0x22a   : > { %v2136_v50 = vpop.eup %2135  ;;  %v590_v51 = vpop.xlane.xlu1 %589 }
 0x22b   : > { %v620_v52 = vsub.f32 %v534_v18, %v590_v51  ;;  %v2589_v54 = vmul.f32 %v2136_v50, %v2518_v1  ;;  %v2138_v55 = vpop.eup %2137  ;;  %v749_v51 = vsel %vm748_vm1, %v740_v48, 0.0 }
 0x22c   : > { %v2140_v63 = vpop.eup %2139  ;;  %v2598_v60 = vmul.f32 %v2138_v55, %v2506_v56  ;;  %v2664_v55 = vld [vmem:[%s2579_s19 + $0x8] sm:$0xff]  }
 0x22d   : > { %v644_v57 = vmul.f32 1.442695, %v620_v52  ;;  %v802_v58 = vpack.c.bf16 %v2589_v54, %v2586_v53  ;;  %v2607_v15 = vmul.f32 %v2140_v63, %v2522_v4  ;;  %v741_v52 = vunpack.c.h.bf16 %v2652_v46 }
 0x22e   : > { %v593_v61 = vpop.xlane.xlu1 %592  ;;  %v803_v3 = vpack.c.bf16 %v2594_v59, %v2598_v60  ;;  %v743_v63 = vunpack.c.h.bf16 %v2664_v55 }
 0x22f   : > { %2147 = vpow2.f32 %v644_v57  ;;  %v621_v0 = vsub.f32 %v2540_v21, %v593_v61  ;;  %806 = vxpose.xlu0.c.b16.start [1/4] (short) (narrow) %v802_v58, 32  ;;  %v752_v57 = vsel %vm748_vm1, %v741_v52, 0.0 }
 0x230   : > { %v2142_v2 = vpop.eup %2141 }
 0x231   : > { %v646_v1 = vmul.f32 1.442695, %v621_v0  ;;  %v2603_v5 = vmul.f32 %v2142_v2, %v2526_v12  ;;  %v2144_v11 = vpop.eup %2143  ;;  %v2671_v0 = vld [vmem:[%s2579_s19 + $0x10] sm:$0xff]   ;;  %v758_v2 = vsel %vm748_vm1, %v743_v63, 0.0  ;;  %s1580_s19 = sand.u32 1, %s2422_s9  }
 0x232   : > { %v596_v62 = vpop.xlane.xlu1 %595  ;;  %v2612_v19 = vmul.f32 %v2144_v11, %v2528_v13  ;;  %v745_v11 = vunpack.c.h.bf16 %v2671_v0  ;;  %s2976_s1 = scalar_lea.sflag [#allocation5], %s1580_s19 }
 0x233   : > { %2149 = vpow2.f32 %v646_v1  ;;  %v622_v14 = vsub.f32 %v2544_v24, %v596_v62  ;;  %807 = vxpose.xlu0.c.b16.cont [2/4] (short) (narrow) %v803_v3, 32  ;;  %v804_v18 = vpack.c.bf16 %v2603_v5, %v2607_v15  ;;  %v744_v1 = vunpack.c.l.bf16 %v2671_v0 }
 0x234   : > { %v2146_v16 = vpop.eup %2145  ;;  %v764_v62 = vsel %vm748_vm1, %v745_v11, 0.0 }
 0x235   : > { %v648_v56 = vmul.f32 1.442695, %v622_v14  ;;  %v2615_v12 = vmul.f32 %v2146_v16, %v2534_v17  ;;  %v746_v14 = vunpack.c.l.bf16 %v2582_v40 }
 0x236   : > { %v599_v20 = vpop.xlane.xlu1 %598 }
 0x237   : > { %2151 = vpow2.f32 %v648_v56  ;;  %v623_v21 = vsub.f32 %v2549_v27, %v599_v20  ;;  %808 = vxpose.xlu0.c.b16.cont [3/4] (short) (narrow) %v804_v18, 32  ;;  %v805_v4 = vpack.c.bf16 %v2615_v12, %v2612_v19  ;;  %v767_v16 = vsel %vm748_vm1, %v746_v14, 0.0 }
 0x238   : > { %v747_v56 = vunpack.c.h.bf16 %v2582_v40 }
 0x239   : > { %v650_v22 = vmul.f32 1.442695, %v623_v21  ;;  %1970 = vmatprep.subr.bf16.mxu0 %v805_v4 }
 0x23a   : > { %v602_v23 = vpop.xlane.xlu1 %601  ;;  %1971 = vmatpush3.bf16.msra.mxu0 %v805_v4 }
 0x23b   : > { %2153 = vpow2.f32 %v650_v22  ;;  %v624_v24 = vsub.f32 %v2554_v30, %v602_v23  ;;  %809 = vxpose.xlu0.c.b16.end [4/4] (short) (narrow) %v805_v4, 32  ;;  %1972 = vmatprep.subr.bf16.mxu0 %v804_v18  ;;  %v1154_v4 = vsel %vm442_vm0, %v2589_v54, 0.0  ;;  %v1153_v23 = vsel %vm442_vm0, %v2586_v53, 0.0 }
 0x23c   : > { %v2621_v13 = vpop.eup %2147 }
 0x23d   : > { %v652_v17 = vmul.f32 1.442695, %v624_v24  ;;  %v684_v25 = vsel %vm442_vm0, %v2621_v13, 0.0 }
 0x23e   : > { %685 = vadd.xlane.f32.xlu1 %v684_v25  ;;  %v605_v26 = vpop.xlane.xlu1 %604  ;;  %1973 = vmatpush3.bf16.msra.mxu0 %v804_v18  ;;  %v770_v18 = vsel %vm748_vm1, %v747_v56, 0.0  ;;  %v1158_v25 = vsel %vm442_vm0, %v2594_v59, 0.0 }
 0x23f   : > { %2155 = vpow2.f32 %v652_v17  ;;  %v625_v27 = vsub.f32 %v2559_v33, %v605_v26  ;;  %1974 = vmatprep.subr.bf16.mxu0 %v803_v3 }
 0x240   : > { %v2626_v28 = vpop.eup %2149 }
 0x241   : > { %v654_v29 = vmul.f32 1.442695, %v625_v27  ;;  %v687_v30 = vsel %vm442_vm0, %v2626_v28, 0.0  ;;  %v1160_v27 = vsel %vm442_vm0, %v2607_v15, 0.0 }
 0x242   : > { %688 = vadd.xlane.f32.xlu1 %v687_v30  ;;  %v608_v31 = vpop.xlane.xlu1 %607  ;;  %1975 = vmatpush3.bf16.msra.mxu0 %v803_v3  ;;  %v761_v3 = vsel %vm748_vm1, %v744_v1, 0.0 }
 0x243   : > { %2157 = vpow2.f32 %v654_v29  ;;  %v626_v32 = vsub.f32 %v2564_v35, %v608_v31  ;;  %1976 = vmatprep.subr.bf16.mxu0 %v802_v58 }
 0x244   : > { %v2631_v34 = vpop.eup %2151 }
 0x245   : > { %v656_v36 = vmul.f32 1.442695, %v626_v32  ;;  %v690_v33 = vsel %vm442_vm0, %v2631_v34, 0.0  ;;  %v1162_v32 = vsel %vm442_vm0, %v2603_v5, 0.0 }
 0x246   : > { %691 = vadd.xlane.f32.xlu1 %v690_v33  ;;  %v611_v38 = vpop.xlane.xlu1 %610  ;;  %1977 = vmatpush3.bf16.msra.mxu0 %v802_v58  ;;  %v742_v58 = vunpack.c.l.bf16 %v2664_v55 }
 0x247   : > { %2159 = vpow2.f32 %v656_v36  ;;  %v627_v39 = vsub.f32 %v2569_v37, %v611_v38  ;;  %1994 = vmatprep.subr.bf16.mxu0 %v2582_v40 }
 0x248   : > { %v2637_v10 = vpop.eup %2153  ;;  %v755_v61 = vsel %vm748_vm1, %v742_v58, 0.0 }
 0x249   : > { %v658_v41 = vmul.f32 1.442695, %v627_v39  ;;  %v693_v35 = vsel %vm442_vm0, %v2637_v10, 0.0 }
 0x24a   : > { %694 = vadd.xlane.f32.xlu1 %v693_v35 }
 0x24b   : > { %2161 = vpow2.f32 %v658_v41 }
 0x24c   : > { %v2641_v42 = vpop.eup %2155 }
 0x24d   : > { %v696_v43 = vsel %vm442_vm0, %v2641_v42, 0.0 }
 0x24e   : > { %697 = vadd.xlane.f32.xlu1 %v696_v43  ;;  %v1164_v43 = vsel %vm442_vm0, %v2612_v19, 0.0 }
 0x250   : > { %v2645_v44 = vpop.eup %2157 }
 0x251   : > { %v699_v37 = vsel %vm442_vm0, %v2645_v44, 0.0 }
 0x252   : > { %700 = vadd.xlane.f32.xlu1 %v699_v37 }
 0x254   : > { %v2649_v45 = vpop.eup %2159 }
 0x255   : > { %v702_v47 = vsel %vm442_vm0, %v2649_v45, 0.0 }
 0x256   : > { %703 = vadd.xlane.f32.xlu1 %v702_v47 }
 0x258   : > { %v2657_v49 = vpop.eup %2161 }
 0x259   : > { %v705_v50 = vsel %vm442_vm0, %v2657_v49, 0.0 }
 0x25a   : > { %706 = vadd.xlane.f32.xlu0 %v705_v50 }
 0x25e   : > { %750 = vadd.xlane.f32.xlu0 %v749_v51 }
 0x262   : > { %753 = vadd.xlane.f32.xlu0 %v752_v57 }
 0x266   : > { %756 = vadd.xlane.f32.xlu0 %v755_v61 }
 0x26a   : > { %759 = vadd.xlane.f32.xlu0 %v758_v2 }
 0x26e   : > { %762 = vadd.xlane.f32.xlu0 %v761_v3 }
 0x272   : > { %765 = vadd.xlane.f32.xlu0 %v764_v62 }
 0x276   : > { %768 = vadd.xlane.f32.xlu0 %v767_v16 }
 0x27a   : > { %771 = vadd.xlane.f32.xlu0 %v770_v18 }
 0x291   : > { %v814_v20 = vpop.trf.xlu0 }
 0x292   : > { %1954 = vmatprep.mubr.msk.bf16.mxu1 %vm748_vm1, %v814_v20 }
 0x295   : > { %v815_v21 = vpop.trf.xlu0 }
 0x296   : > { %1955 = vmatmul.mubr.msk.bf16.vlgmr.msra.gmra.mxu1 %vm748_vm1, %v815_v21 }
 0x297   : > { %1959 = vmatpush3.bf16.msra.mxu1 %v2582_v40  ;;  %1966 = vmatprep.mubr.msk.bf16.mxu1 %vm748_vm1, %v814_v20 }
 0x298   : > { %1960 = vmatprep.subr.bf16.mxu1 %v2671_v0 }
 0x29b   : > { %1961 = vmatpush3.bf16.msra.mxu1 %v2671_v0 }
 0x29c   : > { %1962 = vmatprep.subr.bf16.mxu1 %v2664_v55 }
 0x29f   : > { %1963 = vmatpush3.bf16.msra.mxu1 %v2664_v55 }
 0x2a0   : > { %1964 = vmatprep.subr.bf16.mxu1 %v2652_v46 }
 0x2a3   : > { %1965 = vmatpush3.bf16.msra.mxu1 %v2652_v46 }
 0x2a4   : > { %1982 = vmatprep.subr.bf16.mxu1 %v2481_v9 }
 0x2a6   : > { %1967 = vmatmul.mubr.msk.bf16.vlgmr.msra.gmra.mxu1 %vm748_vm1, %v815_v21 }
 0x2a7   : > { %1983 = vmatpush3.bf16.msra.mxu1 %v2481_v9  ;;  %v1155_v9 = vadd.f32 %v1154_v4, %v1153_v23 }
 0x2a8   : > { %1984 = vmatprep.subr.bf16.mxu1 %v2475_v8 }
 0x2ab   : > { %1985 = vmatpush3.bf16.msra.mxu1 %v2475_v8  ;;  %v1156_v8 = vsel %vm442_vm0, %v2598_v60, 0.0 }
 0x2ac   : > { %1986 = vmatprep.subr.bf16.mxu1 %v2473_v7  ;;  %v1157_v17 = vadd.f32 %v1156_v8, %v1155_v9 }
 0x2af   : > { %1987 = vmatpush3.bf16.msra.mxu1 %v2473_v7 }
 0x2b0   : > { %1988 = vmatprep.subr.bf16.mxu1 %v2468_v6 }
 0x2b3   : > { %1989 = vmatpush3.bf16.msra.mxu1 %v2468_v6  ;;  %v1159_v6 = vadd.f32 %v1158_v25, %v1157_v17 }
 0x2b5   : > { %v1161_v29 = vadd.f32 %v1160_v27, %v1159_v6 }
 0x2b7   : > { %v1163_v33 = vadd.f32 %v1162_v32, %v1161_v29 }
 0x2b9   : > { %v1165_v37 = vadd.f32 %v1164_v43, %v1163_v33 }
 0x2c7   : > { %v686_v22 = vpop.xlane.xlu1 %685 }
 0x2c8   : > { %2163 = vrcp.f32 %v686_v22 }
 0x2cb   : > { %v689_v24 = vpop.xlane.xlu1 %688 }
 0x2cc   : > { %2165 = vrcp.f32 %v689_v24 }
 0x2cf   : > { %v692_v7 = vpop.xlane.xlu1 %691 }
 0x2d0   : > { %2167 = vrcp.f32 %v692_v7 }
 0x2d3   : > { %v695_v26 = vpop.xlane.xlu1 %694 }
 0x2d4   : > { %2169 = vrcp.f32 %v695_v26 }
 0x2d5   : > { %v2164_v30 = vpop.eup %2163 }
 0x2d6   : > { %v2714_v38 = vmul.f32 %v2164_v30, %v2621_v13  ;;  %v1166_v13 = vsel %vm442_vm0, %v2615_v12, 0.0 }
 0x2d7   : > { %v698_v31 = vpop.xlane.xlu1 %697 }
 0x2d8   : > { %2171 = vrcp.f32 %v698_v31 }
 0x2d9   : > { %v2166_v36 = vpop.eup %2165 }
 0x2da   : > { %v2717_v39 = vmul.f32 %v2166_v36, %v2626_v28  ;;  %v1167_v28 = vadd.f32 %v1166_v13, %v1165_v37 }
 0x2db   : > { %v701_v41 = vpop.xlane.xlu1 %700 }
 0x2dc   : > { %2173 = vrcp.f32 %v701_v41  ;;  %v2721_v35 = vpack.c.bf16 %v2717_v39, %v2714_v38  ;;  %v1168_v61 = vrot.slane %v1167_v28, 4 }
 0x2dd   : > { %v2168_v47 = vpop.eup %2167 }
 0x2de   : > { %1201 = vxpose.xlu1.c.b16.start [1/4] (short) (narrow) %v2721_v35, 32  ;;  %v2729_v51 = vmul.f32 %v2168_v47, %v2631_v34  ;;  %v1169_v3 = vadd.f32 %v1168_v61, %v1167_v28 }
 0x2df   : > { %v704_v48 = vpop.xlane.xlu1 %703 }
 0x2e0   : > { %2175 = vrcp.f32 %v704_v48  ;;  %v1170_v56 = vrot.slane %v1169_v3, 2 }
 0x2e1   : > { %v2170_v50 = vpop.eup %2169 }
 0x2e2   : > { %v2732_v52 = vmul.f32 %v2170_v50, %v2637_v10  ;;  %v1171_v23 = vadd.f32 %v1170_v56, %v1169_v3 }
 0x2e3   : > { %v707_v57 = vpop.xlane.xlu0 %706 }
 0x2e4   : > { %2177 = vrcp.f32 %v707_v57  ;;  %v2736_v58 = vpack.c.bf16 %v2732_v52, %v2729_v51  ;;  %v1172_v29 = vrot.slane %v1171_v23, 1 }
 0x2e5   : > { %v2172_v63 = vpop.eup %2171 }
 0x2e6   : > { %1202 = vxpose.xlu1.c.b16.cont [2/4] (short) (narrow) %v2736_v58, 32  ;;  %v2741_v34 = vmul.f32 %v2172_v63, %v2641_v42  ;;  %v1173_v13 = vadd.f32 %v1172_v29, %v1171_v23 }
 0x2e7   : > { %v751_v2 = vpop.xlane.xlu0 %750 }
 0x2e8   : > { %v1480_v11 = vmul.f32 %v751_v2, %v2714_v38  ;;  %v1107_v27 = vmul.f32 %v751_v2, %v2586_v53  ;;  %v774_v31 = vsel %vm773_vm2, %v751_v2, 0.0 }
 0x2e9   : > { %v2174_v1 = vpop.eup %2173 }
 0x2ea   : > { %v2744_v10 = vmul.f32 %v2174_v1, %v2645_v44  ;;  %v1488_v18 = vsel %vm442_vm0, %v1480_v11, 0.0  ;;  %v1115_v47 = vsel %vm442_vm0, %v1107_v27, 0.0 }
 0x2eb   : > { %v754_v62 = vpop.xlane.xlu0 %753 }
 0x2ec   : > { %v1481_v14 = vmul.f32 %v754_v62, %v2717_v39  ;;  %v2749_v16 = vpack.c.bf16 %v2744_v10, %v2741_v34  ;;  %v1108_v25 = vmul.f32 %v754_v62, %v2589_v54 }
 0x2ed   : > { %v2176_v21 = vpop.eup %2175 }
 0x2ee   : > { %v1489_v20 = vsel %vm442_vm0, %v1481_v14, 0.0  ;;  %1203 = vxpose.xlu1.c.b16.cont [3/4] (short) (narrow) %v2749_v16, 32  ;;  %v2757_v24 = vmul.f32 %v2176_v21, %v2649_v45  ;;  %v775_v45 = vsel %vm773_vm2, %v754_v62, 0.0  ;;  %v1116_v33 = vsel %vm442_vm0, %v1108_v25, 0.0 }
 0x2ef   : > { %v1490_v42 = vadd.f32 %v1489_v20, %v1488_v18  ;;  %v757_v4 = vpop.xlane.xlu0 %756  ;;  %v776_v48 = vadd.f32 %v775_v45, %v774_v31  ;;  %v1117_v63 = vadd.f32 %v1116_v33, %v1115_v47 }
 0x2f0   : > { %v1482_v44 = vmul.f32 %v757_v4, %v2729_v51  ;;  %v1109_v30 = vmul.f32 %v757_v4, %v2598_v60  ;;  %v777_v41 = vsel %vm773_vm2, %v757_v4, 0.0 }
 0x2f1   : > { %v2178_v22 = vpop.eup %2177  ;;  %v778_v2 = vadd.f32 %v777_v41, %v776_v48 }
 0x2f2   : > { %v1491_v9 = vsel %vm442_vm0, %v1482_v44, 0.0  ;;  %v2760_v8 = vmul.f32 %v2178_v22, %v2657_v49  ;;  %v1118_v50 = vsel %vm442_vm0, %v1109_v30, 0.0  ;;  %v1174_v44 = vmul.f32 %v1173_v13, %v1173_v13 }
 0x2f3   : > { %v1492_v17 = vadd.f32 %v1491_v9, %v1490_v42  ;;  %v760_v7 = vpop.xlane.xlu0 %759  ;;  %v1119_v18 = vadd.f32 %v1118_v50, %v1117_v63 }
 0x2f4   : > { %v1483_v6 = vmul.f32 %v760_v7, %v2732_v52  ;;  %v2766_v26 = vpack.c.bf16 %v2760_v8, %v2757_v24  ;;  %v1110_v43 = vmul.f32 %v760_v7, %v2594_v59  ;;  %v779_v28 = vsel %vm773_vm2, %v760_v7, 0.0 }
 0x2f5   : > { %v780_v20 = vadd.f32 %v779_v28, %v778_v2  ;;  %v1175_v31 = vsel %vm1137_vm3, %v1174_v44, 0.0 }
 0x2f6   : > { %v1493_v49 = vsel %vm442_vm0, %v1483_v6, 0.0  ;;  %1204 = vxpose.xlu1.c.b16.end [4/4] (short) (narrow) %v2766_v26, 32  ;;  %2006 = vmatprep.subr.bf16.mxu1 %v2766_v26  ;;  %v1120_v11 = vsel %vm442_vm0, %v1110_v43, 0.0 }
 0x2f7   : > { %v1494_v32 = vadd.f32 %v1493_v49, %v1492_v17  ;;  %v763_v36 = vpop.xlane.xlu0 %762  ;;  %v1121_v22 = vadd.f32 %v1120_v11, %v1119_v18 }
 0x2f8   : > { %v1484_v37 = vmul.f32 %v763_v36, %v2741_v34  ;;  %v1111_v57 = vmul.f32 %v763_v36, %v2607_v15  ;;  %v781_v62 = vsel %vm773_vm2, %v763_v36, 0.0 }
 0x2f9   : > { %v782_v23 = vadd.f32 %v781_v62, %v780_v20 }
 0x2fa   : > { %v1495_v61 = vsel %vm442_vm0, %v1484_v37, 0.0  ;;  %v1122_v21 = vsel %vm442_vm0, %v1111_v57, 0.0 }
 0x2fb   : > { %v1496_v1 = vadd.f32 %v1495_v61, %v1494_v32  ;;  %v766_v3 = vpop.xlane.xlu0 %765  ;;  %v1123_v29 = vadd.f32 %v1122_v21, %v1121_v22 }
 0x2fc   : > { %v1112_v14 = vmul.f32 %v766_v3, %v2603_v5  ;;  %v1485_v56 = vmul.f32 %v766_v3, %v2744_v10  ;;  %v783_v42 = vsel %vm773_vm2, %v766_v3, 0.0 }
 0x2fd   : > { %v784_v45 = vadd.f32 %v783_v42, %v782_v23 }
 0x2fe   : > { %v1497_v4 = vsel %vm442_vm0, %v1485_v56, 0.0  ;;  %v1124_v7 = vsel %vm442_vm0, %v1112_v14, 0.0 }
 0x2ff   : > { %v1498_v9 = vadd.f32 %v1497_v4, %v1496_v1  ;;  %v769_v17 = vpop.xlane.xlu0 %768  ;;  %v1125_v32 = vadd.f32 %v1124_v7, %v1123_v29 }
 0x300   : > { %v785_v25 = vsel %vm773_vm2, %v769_v17, 0.0  ;;  %v1113_v6 = vmul.f32 %v769_v17, %v2612_v19  ;;  %v1486_v27 = vmul.f32 %v769_v17, %v2757_v24 }
 0x301   : > { %v786_v41 = vadd.f32 %v785_v25, %v784_v45 }
 0x302   : > { %v1126_v30 = vsel %vm442_vm0, %v1113_v6, 0.0  ;;  %v1499_v49 = vsel %vm442_vm0, %v1486_v27, 0.0 }
 0x303   : > { %v2798_v36 = vadd.f32 %v1499_v49, %v1498_v9  ;;  %1176 = vadd.xlane.f32.xlu1 %v1175_v31  ;;  %v2800_v33 = vpop.xlane.xlu0 %771  ;;  %v1127_v47 = vadd.f32 %v1126_v30, %v1125_v32 }
 0x304   : > { %v1114_v43 = vmul.f32 %v2800_v33, %v2615_v12  ;;  %v787_v37 = vsel %vm773_vm2, %v2800_v33, 0.0 }
 0x305   : > { %v788_v48 = vadd.f32 %v787_v37, %v786_v41 }
 0x306   : > { %v1128_v13 = vsel %vm442_vm0, %v1114_v43, 0.0 }
 0x307   : > { %v1129_v50 = vadd.f32 %v1128_v13, %v1127_v47  ;;  %789 = vadd.xlane.f32.xlu0 %v788_v48 }
 0x309   : > { %v1130_v28 = vrot.slane %v1129_v50, 4 }
 0x30b   : > { %v1131_v57 = vadd.f32 %v1130_v28, %v1129_v50 }
 0x30d   : > { %v1132_v61 = vrot.slane %v1131_v57, 2 }
 0x30f   : > { %v1133_v63 = vadd.f32 %v1132_v61, %v1131_v57 }
 0x311   : > { %v1134_v2 = vrot.slane %v1133_v63, 1 }
 0x313   : > { %v1135_v1 = vadd.f32 %v1134_v2, %v1133_v63 }
 0x315   : > { %v1136_v3 = vmul.f32 %v1135_v1, %v1135_v1 }
 0x317   : > { %v1138_v11 = vsel %vm1137_vm3, %v1136_v3, 0.0 }
 0x318   : > { %1139 = vadd.xlane.f32.xlu1 %v1138_v11 }
 0x334   : > { %1055 = vxpose.xlu0.b32.start [1/8] (short) (narrow) %v2586_v53, 32 }
 0x338   : > { %1056 = vxpose.xlu0.b32.cont [2/8] (short) (narrow) %v2589_v54, 32 }
 0x33c   : > { %1057 = vxpose.xlu0.b32.cont [3/8] (short) (narrow) %v2598_v60, 32 }
 0x340   : > { %1058 = vxpose.xlu0.b32.cont [4/8] (short) (narrow) %v2594_v59, 32 }
 0x344   : > { %1059 = vxpose.xlu0.b32.cont [5/8] (short) (narrow) %v2607_v15, 32 }
 0x348   : > { %1060 = vxpose.xlu0.b32.cont [6/8] (short) (narrow) %v2603_v5, 32 }
 0x34c   : > { %v2814_v62 = vpop.trf.xlu1  ;;  %1061 = vxpose.xlu0.b32.cont [7/8] (short) (narrow) %v2612_v19, 32 }
 0x34d   : > { %1990 = vmatprep.mubr.msk.bf16.mxu1 %vm748_vm1, %v2814_v62 }
 0x350   : > { %v2819_v14 = vpop.trf.xlu1  ;;  %1062 = vxpose.xlu0.b32.end [8/8] (short) (narrow) %v2615_v12, 32 }
 0x351   : > { %1991 = vmatmul.mubr.msk.bf16.vlgmr.msra.gmra.mxu1 %vm748_vm1, %v2819_v14 }
 0x352   : > { %2007 = vmatpush3.bf16.msra.mxu1 %v2766_v26 }
 0x353   : > { %2008 = vmatprep.subr.bf16.mxu1 %v2749_v16 }
 0x356   : > { %2009 = vmatpush3.bf16.msra.mxu1 %v2749_v16  ;;  %v1956_v53 = vpop.f32.mrf.mxu1 }
 0x357   : > { %2010 = vmatprep.subr.bf16.mxu1 %v2736_v58  ;;  %v883_v54 = vmin.f32 %v1956_v53, 0.0  ;;  %vm903_vm4 = vcmp.gt.f32.partialorder %v1956_v53, 0.0 }
 0x358   : > { %v866_v59 = vpop.f32.mrf.mxu1 }
 0x359   : > { %v889_v60 = vmul.f32 1.442695, %v883_v54  ;;  %v881_v5 = vmin.f32 %v866_v59, 0.0  ;;  %vm901_vm5 = vcmp.gt.f32.partialorder %v866_v59, 0.0 }
 0x35a   : > { %2011 = vmatpush3.bf16.msra.mxu1 %v2736_v58  ;;  %v1957_v15 = vpop.f32.mrf.mxu1 }
 0x35b   : > { %2012 = vmatprep.subr.bf16.mxu1 %v2721_v35  ;;  %2179 = vpow2.f32 %v889_v60  ;;  %v885_v19 = vmul.f32 1.442695, %v881_v5  ;;  %v884_v12 = vmin.f32 %v1957_v15, 0.0  ;;  %vm904_vm6 = vcmp.gt.f32.partialorder %v1957_v15, 0.0 }
 0x35c   : > { %v869_v26 = vpop.f32.mrf.mxu1 }
 0x35d   : > { %2181 = vpow2.f32 %v885_v19  ;;  %v891_v56 = vmul.f32 1.442695, %v884_v12  ;;  %v882_v16 = vmin.f32 %v869_v26, 0.0  ;;  %vm902_vm7 = vcmp.gt.f32.partialorder %v869_v26, 0.0 }
 0x35e   : > { %2013 = vmatpush3.bf16.msra.mxu1 %v2721_v35 }
 0x35f   : > { %2183 = vpow2.f32 %v891_v56  ;;  %v887_v18 = vmul.f32 1.442695, %v882_v16 }
 0x361   : > { %2185 = vpow2.f32 %v887_v18 }
 0x366   : > { %v1968_v20 = vpop.f32.mrf.mxu1 }
 0x368   : > { %v2180_v58 = vpop.eup %2179  ;;  %v975_v21 = vpop.f32.mrf.mxu1 }
 0x369   : > { %v1836_v42 = vadd.f32 -1.0, %v2180_v58 }
 0x36a   : > { %v2182_v4 = vpop.eup %2181  ;;  %v1969_v44 = vpop.f32.mrf.mxu1 }
 0x36b   : > { %v899_v22 = vmul.f32 1.6732632, %v1836_v42  ;;  %v1834_v23 = vadd.f32 -1.0, %v2182_v4  ;;  %v991_v35 = vpack.c.bf16 %v1969_v44, %v1968_v20 }
 0x36c   : > { %v2184_v9 = vpop.eup %2183  ;;  %v978_v17 = vpop.f32.mrf.mxu1 }
 0x36d   : > { %v907_v7 = vsel %vm903_vm4, %v1956_v53, %v899_v22  ;;  %v897_v25 = vmul.f32 1.6732632, %v1834_v23  ;;  %v1837_v6 = vadd.f32 -1.0, %v2184_v9  ;;  %v990_v27 = vpack.c.bf16 %v978_v17, %v975_v21 }
 0x36e   : > { %v2186_v29 = vpop.eup %2185  ;;  %v911_v45 = vmul.f32 1.050701, %v907_v7 }
 0x36f   : > { %v905_v30 = vsel %vm901_vm5, %v866_v59, %v897_v25  ;;  %v900_v49 = vmul.f32 1.6732632, %v1837_v6  ;;  %v1835_v31 = vadd.f32 -1.0, %v2186_v29  ;;  %1978 = vmatprep.mubr.msk.bf16.mxu0 %vm748_vm1, %v990_v27 }
 0x370   : > { %915 = vst.msk [vmem:[%s2838_s22 + $0x10] sm:$0xff] %vm442_vm0, %v911_v45  ;;  %v909_v32 = vmul.f32 1.050701, %v905_v30  ;;  %1979 = vmatmul.mubr.msk.bf16.vlgmr.msra.gmra.mxu0 %vm748_vm1, %v991_v35 }
 0x371   : > { %v908_v41 = vsel %vm904_vm6, %v1957_v15, %v900_v49  ;;  %v898_v43 = vmul.f32 1.6732632, %v1835_v31  ;;  %1995 = vmatpush3.bf16.msra.mxu0 %v2582_v40  ;;  %2002 = vmatprep.mubr.msk.bf16.mxu0 %vm748_vm1, %v2814_v62 }
 0x372   : > { %913 = vst.msk [vmem:[%s2838_s22] sm:$0xff] %vm442_vm0, %v909_v32  ;;  %v912_v37 = vmul.f32 1.050701, %v908_v41  ;;  %1996 = vmatprep.subr.bf16.mxu0 %v2671_v0 }
 0x373   : > { %v906_v47 = vsel %vm902_vm7, %v869_v26, %v898_v43  ;;  %v1487_v26 = vmul.f32 %v2800_v33, %v2760_v8 }
 0x374   : > { %916 = vst.msk [vmem:[%s2838_s22 + $0x18] sm:$0xff] %vm442_vm0, %v912_v37  ;;  %v910_v48 = vmul.f32 1.050701, %v906_v47 }
 0x375   : > { %1997 = vmatpush3.bf16.msra.mxu0 %v2671_v0 }
 0x376   : > { %914 = vst.msk [vmem:[%s2838_s22 + $0x8] sm:$0xff] %vm442_vm0, %v910_v48  ;;  %1998 = vmatprep.subr.bf16.mxu0 %v2664_v55 }
 0x379   : > { %1999 = vmatpush3.bf16.msra.mxu0 %v2664_v55 }
 0x37a   : > { %2000 = vmatprep.subr.bf16.mxu0 %v2652_v46 }
 0x37d   : > { %2001 = vmatpush3.bf16.msra.mxu0 %v2652_v46 }
 0x380   : > { %2003 = vmatmul.mubr.msk.bf16.vlgmr.msra.gmra.mxu0 %vm748_vm1, %v2819_v14 }
 0x390   : > { %v790_v40 = vpop.xlane.xlu0 %789 }
 0x391   : > { %v791_v13 = vrot.slane %v790_v40, 4 }
 0x393   : > { %v792_v50 = vadd.f32 %v791_v13, %v790_v40 }
 0x395   : > { %v793_v28 = vrot.slane %v792_v50, 2 }
 0x397   : > { %v794_v57 = vadd.f32 %v793_v28, %v792_v50 }
 0x399   : > { %v795_v61 = vrot.slane %v794_v57, 1 }
 0x39b   : > { %v796_v0 = vadd.f32 %v795_v61, %v794_v57 }
 0x39d   : > { %2018 = vpush %v796_v0  ;;  %v2883_v0 = vld [vmem:[%s3129_s4 + $0x10] sm:$0xff] }
 0x3b0   : > { %v1071_v63 = vpop.trf.xlu0 }
 0x3b1   : > { %v1087_v3 = vmul.f32 %v1071_v63, %v975_v21 }
 0x3b3   : > { %v1091_v46 = vsel %vm748_vm1, %v1087_v3, 0.0 }
 0x3b4   : > { %v1072_v2 = vpop.trf.xlu0 }
 0x3b5   : > { %v1088_v1 = vmul.f32 %v1072_v2, %v978_v17 }
 0x3b7   : > { %v1092_v11 = vsel %vm748_vm1, %v1088_v1, 0.0 }
 0x3b8   : > { %v1073_v55 = vpop.trf.xlu0  ;;  %v1093_v53 = vadd.f32 %v1092_v11, %v1091_v46  ;;  %v2898_v46 = vld [vmem:[%s3129_s4 + $0x18] sm:$0xff] }
 0x3b9   : > { %v1089_v62 = vmul.f32 %v1968_v20, %v1073_v55  ;;  %v1501_v20 = vsel %vm442_vm0, %v1487_v26, 0.0  ;;  %v2890_v55 = vld [vmem:[%s3129_s4] sm:$0xff] }
 0x3ba   : > { %v1502_v22 = vadd.f32 %v1501_v20, %v2798_v36 }
 0x3bb   : > { %v1094_v14 = vsel %vm748_vm1, %v1089_v62, 0.0 }
 0x3bc   : > { %v1074_v54 = vpop.trf.xlu0  ;;  %v1095_v60 = vadd.f32 %v1094_v14, %v1093_v53  ;;  %v1503_v17 = vrot.slane %v1502_v22, 4 }
 0x3bd   : > { %v1090_v59 = vmul.f32 %v1969_v44, %v1074_v54 }
 0x3be   : > { %v1504_v7 = vadd.f32 %v1503_v17, %v1502_v22 }
 0x3bf   : > { %v1096_v5 = vsel %vm748_vm1, %v1090_v59, 0.0  ;;  %v2910_v59 = vld [vmem:[%s3129_s4 + $0x8] sm:$0xff] }
 0x3c0   : > { %v1097_v15 = vadd.f32 %v1096_v5, %v1095_v60  ;;  %v1505_v6 = vrot.slane %v1504_v7, 2 }
 0x3c2   : > { %1098 = vadd.xlane.f32.xlu1 %v1097_v15  ;;  %v1506_v31 = vadd.f32 %v1505_v6, %v1504_v7 }
 0x3c4   : > { %v1507_v13 = vrot.slane %v1506_v31, 1 }
 0x3c6   : > { %v1508_v2 = vadd.f32 %v1507_v13, %v1506_v31  ;;  %v1526_v31 = vsel %vm442_vm0, %v2717_v39, 0.0  ;;  %v1534_v13 = vsel %vm442_vm0, %v2744_v10, 0.0 }
 0x3c8   : > { %v1509_v14 = vmul.f32 %v1508_v2, %v1508_v2 }
 0x3ca   : > { %v1510_v15 = vsel %vm1137_vm3, %v1509_v14, 0.0 }
 0x3ce   : > { %s2019_s23 = spop %2018 }
 0x3cf   : > { %s798_s25 = smax.f32 %s2349_s24, %s2019_s23  ;;  %s2902_s23 = scalar_lea.vmem [#allocation4], %s1807_s21 }
 0x3d0   : > { %v799_v19 = vstv %s798_s25  ;;  %s1878_s24 = sshll.u32 %s2422_s9, 10  ;;  %s2350_s25 = smov [#allocation4]  }
 0x3d1   : > { %2187 = vrcp.f32 %v799_v19  ;;  %s2974_s0 = scalar_lea.hbm %s3131_s5, %s1878_s24 }
 0x3de   : > { %v2188_v12 = vpop.eup %2187 }
 0x3df   : > { %2020 = vpush %v2188_v12  ;;  %v1177_v12 = vpop.xlane.xlu1 %1176 }
 0x3e0   : > { %v1178_v20 = vrot.slane %v1177_v12, 4 }
 0x3e2   : > { %v1179_v22 = vadd.f32 %v1178_v20, %v1177_v12 }
 0x3e3   : > { %v1140_v26 = vpop.xlane.xlu1 %1139 }
 0x3f5   : > { %1428 = vxpose.xlu1.b32.start [1/8] (short) (narrow) %v2714_v38, 32 }
 0x3f9   : > { %1429 = vxpose.xlu1.b32.cont [2/8] (short) (narrow) %v2717_v39, 32 }
 0x3fd   : > { %1430 = vxpose.xlu1.b32.cont [3/8] (short) (narrow) %v2729_v51, 32 }
 0x401   : > { %1431 = vxpose.xlu1.b32.cont [4/8] (short) (narrow) %v2732_v52, 32 }
 0x405   : > { %1432 = vxpose.xlu1.b32.cont [5/8] (short) (narrow) %v2741_v34, 32 }
 0x409   : > { %1433 = vxpose.xlu1.b32.cont [6/8] (short) (narrow) %v2744_v10, 32 }
 0x40d   : > { %1434 = vxpose.xlu1.b32.cont [7/8] (short) (narrow) %v2757_v24, 32 }
 0x410   : > { %s2944_s21 = spop %2020 }
 0x411   : > { %1435 = vxpose.xlu1.b32.end [8/8] (short) (narrow) %v2760_v8, 32  ;;  %v1992_v56 = vpop.f32.mrf.mxu1 }
 0x412   : > { %v1278_v16 = vmin.f32 %v1992_v56, 0.0  ;;  %vm1298_vm8 = vcmp.gt.f32.partialorder %v1992_v56, 0.0 }
 0x413   : > { %v1261_v18 = vpop.f32.mrf.mxu1 }
 0x414   : > { %v1284_v58 = vmul.f32 1.442695, %v1278_v16  ;;  %v1276_v21 = vmin.f32 %v1261_v18, 0.0  ;;  %vm1296_vm9 = vcmp.gt.f32.partialorder %v1261_v18, 0.0 }
 0x415   : > { %v1993_v42 = vpop.f32.mrf.mxu1 }
 0x416   : > { %2189 = vpow2.f32 %v1284_v58  ;;  %v1280_v4 = vmul.f32 1.442695, %v1276_v21  ;;  %v1279_v44 = vmin.f32 %v1993_v42, 0.0  ;;  %vm1299_vm10 = vcmp.gt.f32.partialorder %v1993_v42, 0.0 }
 0x417   : > { %v1264_v23 = vpop.f32.mrf.mxu1 }
 0x418   : > { %2191 = vpow2.f32 %v1280_v4  ;;  %v1286_v9 = vmul.f32 1.442695, %v1279_v44  ;;  %v1277_v35 = vmin.f32 %v1264_v23, 0.0  ;;  %vm1297_vm11 = vcmp.gt.f32.partialorder %v1264_v23, 0.0 }
 0x41a   : > { %2193 = vpow2.f32 %v1286_v9  ;;  %v1282_v33 = vmul.f32 1.442695, %v1277_v35  ;;  %v1180_v35 = vrot.slane %v1179_v22, 2 }
 0x41c   : > { %2195 = vpow2.f32 %v1282_v33  ;;  %v1181_v6 = vadd.f32 %v1180_v35, %v1179_v22 }
 0x423   : > { %v2190_v25 = vpop.eup %2189 }
 0x424   : > { %v1851_v27 = vadd.f32 -1.0, %v2190_v25 }
 0x425   : > { %v2192_v29 = vpop.eup %2191 }
 0x426   : > { %v1294_v45 = vmul.f32 1.6732632, %v1851_v27  ;;  %v1849_v30 = vadd.f32 -1.0, %v2192_v29 }
 0x427   : > { %v2194_v49 = vpop.eup %2193 }
 0x428   : > { %v1302_v36 = vsel %vm1298_vm8, %v1992_v56, %v1294_v45  ;;  %v1292_v32 = vmul.f32 1.6732632, %v1849_v30  ;;  %v1852_v41 = vadd.f32 -1.0, %v2194_v49  ;;  %v1182_v30 = vrot.slane %v1181_v6, 1 }
 0x429   : > { %v2196_v43 = vpop.eup %2195  ;;  %v1306_v37 = vmul.f32 1.050701, %v1302_v36 }
 0x42a   : > { %v1300_v47 = vsel %vm1296_vm9, %v1261_v18, %v1292_v32  ;;  %v1295_v48 = vmul.f32 1.6732632, %v1852_v41  ;;  %v1850_v40 = vadd.f32 -1.0, %v2196_v43  ;;  %v1141_v18 = vrot.slane %v1140_v26, 4 }
 0x42b   : > { %1855 = vst.msk [vmem:[%s2838_s22 + $0x30] sm:$0xff] %vm442_vm0, %v1306_v37  ;;  %v1304_v50 = vmul.f32 1.050701, %v1300_v47  ;;  %v1183_v32 = vadd.f32 %v1182_v30, %v1181_v6  ;;  %v1525_v41 = vsel %vm442_vm0, %v2714_v38, 0.0  ;;  %v1528_v43 = vsel %vm442_vm0, %v2729_v51, 0.0 }
 0x42c   : > { %v1303_v28 = vsel %vm1299_vm10, %v1993_v42, %v1295_v48  ;;  %v1293_v57 = vmul.f32 1.6732632, %v1850_v40  ;;  %v1142_v4 = vadd.f32 %v1141_v18, %v1140_v26  ;;  %v1527_v37 = vadd.f32 %v1526_v31, %v1525_v41 }
 0x42d   : > { %1853 = vst.msk [vmem:[%s2838_s22 + $0x20] sm:$0xff] %vm442_vm0, %v1304_v50  ;;  %v1307_v61 = vmul.f32 1.050701, %v1303_v28  ;;  %v1530_v47 = vsel %vm442_vm0, %v2732_v52, 0.0  ;;  %v1532_v40 = vsel %vm442_vm0, %v2741_v34, 0.0  ;;  %v1536_v38 = vsel %vm442_vm0, %v2757_v24, 0.0 }
 0x42e   : > { %v1301_v63 = vsel %vm1297_vm11, %v1264_v23, %v1293_v57  ;;  %v1143_v23 = vrot.slane %v1142_v4, 2  ;;  %v1529_v48 = vadd.f32 %v1528_v43, %v1527_v37  ;;  %v1538_v51 = vsel %vm442_vm0, %v2760_v8, 0.0 }
 0x42f   : > { %1856 = vst.msk [vmem:[%s2838_s22 + $0x38] sm:$0xff] %vm442_vm0, %v1307_v61  ;;  %v1305_v1 = vmul.f32 1.050701, %v1301_v63 }
 0x430   : > { %v1980_v3 = vpop.f32.mrf.mxu0  ;;  %v1144_v7 = vadd.f32 %v1143_v23, %v1142_v4  ;;  %v1531_v39 = vadd.f32 %v1530_v47, %v1529_v48 }
 0x431   : > { %v1049_v11 = vmul.f32 %v1980_v3, %v2883_v0  ;;  %1854 = vst.msk [vmem:[%s2838_s22 + $0x28] sm:$0xff] %vm442_vm0, %v1305_v1 }
 0x432   : > { %v1032_v62 = vpop.f32.mrf.mxu0  ;;  %v1145_v29 = vrot.slane %v1144_v7, 1  ;;  %v1533_v50 = vadd.f32 %v1532_v40, %v1531_v39 }
 0x433   : > { %1053 = vst.msk [vmem:[%s2902_s23 + $0x10] sm:$0xff] %vm442_vm0, %v1049_v11  ;;  %v1047_v53 = vmul.f32 %v1032_v62, %v2890_v55 }
 0x434   : > { %v1981_v54 = vpop.f32.mrf.mxu0  ;;  %v1146_v36 = vadd.f32 %v1145_v29, %v1144_v7  ;;  %v1535_v28 = vadd.f32 %v1534_v13, %v1533_v50 }
 0x435   : > { %1051 = vst.msk [vmem:[%s2902_s23] sm:$0xff] %vm442_vm0, %v1047_v53  ;;  %v1050_v60 = vmul.f32 %v1981_v54, %v2898_v46 }
 0x436   : > { %v1035_v5 = vpop.f32.mrf.mxu0  ;;  %v1537_v57 = vadd.f32 %v1536_v38, %v1535_v28 }
 0x437   : > { %1054 = vst.msk [vmem:[%s2902_s23 + $0x18] sm:$0xff] %vm442_vm0, %v1050_v60  ;;  %v1048_v19 = vmul.f32 %v1035_v5, %v2910_v59 }
 0x438   : > { %1511 = vadd.xlane.f32.xlu1 %v1510_v15  ;;  %v1539_v61 = vadd.f32 %v1538_v51, %v1537_v57 }
 0x439   : > { %1052 = vst.msk [vmem:[%s2902_s23 + $0x8] sm:$0xff] %vm442_vm0, %v1048_v19 }
 0x43a   : > { %v1540_v63 = vrot.slane %v1539_v61, 4 }
 0x43c   : > { %v1541_v52 = vadd.f32 %v1540_v63, %v1539_v61 }
 0x43e   : > { %v1542_v1 = vrot.slane %v1541_v52, 2 }
 0x440   : > { %v2004_v56 = vpop.f32.mrf.mxu0  ;;  %v1543_v11 = vadd.f32 %v1542_v1, %v1541_v52 }
 0x442   : > { %v1347_v16 = vpop.f32.mrf.mxu0  ;;  %v1544_v54 = vrot.slane %v1543_v11, 1 }
 0x444   : > { %v2005_v58 = vpop.f32.mrf.mxu0  ;;  %v1545_v19 = vadd.f32 %v1544_v54, %v1543_v11 }
 0x445   : > { %v1363_v21 = vpack.c.bf16 %v2005_v58, %v2004_v56 }
 0x446   : > { %v1350_v42 = vpop.f32.mrf.mxu0  ;;  %v1546_v20 = vmul.f32 %v1545_v19, %v1545_v19 }
 0x447   : > { %v1362_v44 = vpack.c.bf16 %v1350_v42, %v1347_v16 }
 0x449   : > { %2014 = vmatprep.mubr.msk.bf16.mxu1 %vm748_vm1, %v1362_v44 }
 0x44a   : > { %2015 = vmatmul.mubr.msk.bf16.vlgmr.msra.gmra.mxu1 %vm748_vm1, %v1363_v21 }
 0x44b   : > { %v1099_v9 = vpop.xlane.xlu1 %1098 }
 0x44c   : > { %v1100_v33 = vrot.slane %v1099_v9, 4 }
 0x44e   : > { %v1101_v17 = vadd.f32 %v1100_v33, %v1099_v9 }
 0x450   : > { %v1102_v25 = vrot.slane %v1101_v17, 2 }
 0x452   : > { %v1103_v27 = vadd.f32 %v1102_v25, %v1101_v17 }
 0x454   : > { %v1104_v45 = vrot.slane %v1103_v27, 1 }
 0x456   : > { %v1105_v49 = vadd.f32 %v1104_v45, %v1103_v27 }
 0x458   : > { %2022 = vpush %v1105_v49 }
 0x459   : > { %2024 = vpush %v1146_v36 }
 0x45a   : > { %2026 = vpush %v1183_v32 }
 0x471   : > { %v1444_v2 = vpop.trf.xlu1 }
 0x472   : > { %v1460_v62 = vmul.f32 %v1444_v2, %v1347_v16  ;;  %v1547_v16 = vsel %vm1137_vm3, %v1546_v20, 0.0 }
 0x474   : > { %v1464_v24 = vsel %vm748_vm1, %v1460_v62, 0.0 }
 0x475   : > { %v1445_v3 = vpop.trf.xlu1 }
 0x476   : > { %v1461_v34 = vmul.f32 %v1445_v3, %v1350_v42 }
 0x478   : > { %v1465_v10 = vsel %vm748_vm1, %v1461_v34, 0.0 }
 0x479   : > { %v1446_v14 = vpop.trf.xlu1  ;;  %v1466_v8 = vadd.f32 %v1465_v10, %v1464_v24 }
 0x47a   : > { %v1462_v53 = vmul.f32 %v2004_v56, %v1446_v14 }
 0x47c   : > { %v1467_v60 = vsel %vm748_vm1, %v1462_v53, 0.0 }
 0x47d   : > { %v1447_v5 = vpop.trf.xlu1  ;;  %v1468_v12 = vadd.f32 %v1467_v60, %v1466_v8 }
 0x47e   : > { %v1463_v15 = vmul.f32 %v2005_v58, %v1447_v5 }
 0x480   : > { %v1469_v26 = vsel %vm748_vm1, %v1463_v15, 0.0 }
 0x481   : > { %v1470_v18 = vadd.f32 %v1469_v26, %v1468_v12 }
 0x483   : > { %1471 = vadd.xlane.f32.xlu0 %v1470_v18 }
 0x487   : > { %1548 = vadd.xlane.f32.xlu0 %v1547_v16 }
 0x489   : > { %s2023_s26 = spop %2022 }
 0x48a   : > { %s2025_s12 = spop %2024 }
 0x48b   : > { %s1148_s13 = smul.f32 %s2025_s12, %s2944_s21  ;;  %s2027_s17 = spop %2026 }
 0x48c   : > { %v1185_v56 = vstv %s2027_s17  ;;  %s2966_s12 = scalar_lea.hbm %s3130_s6, %s1878_s24 }
 0x48d   : > { %s2947_s18 = ssub.f32 %s2023_s26, %s1148_s13  ;;  %2197 = vrsqrt.f32 %v1185_v56  ;;  %vm1188_vm12 = vcmp.eq.f32.partialorder %v1185_v56, inf  ;;  %v1191_v42 = vand.u32 2147483648, %v1185_v56  ;;  %vm1190_vm13 = vcmp.eq.f32.partialorder %v1185_v56, 0.0  ;;  %s1618_s13 = sshll.u32 %s2902_s23, 4  ;;  %s2969_s13 = int_to_ptr.vmem [resolvable:$true] %s1618_s13 }
 0x48e   : > { %s2201_s2 = scalar_lea.vmem %s2969_s13, 1024  ;;  %s2205_s26 = sshll.u32 %s2350_s25, 4  ;;  %s2206_s26 = int_to_ptr.vmem [resolvable:$false] %s2205_s26 }
 0x48f   : > { %p2202_p11 = scmp.ne.s32.totalorder %s2969_s13, %s2201_s2  ;;  %p2208_p0 = scmp.lt.s32.totalorder %s2969_s13, %s2206_s26 }
 0x491   : > { %p2203_p12 = pnand %p2202_p11, %p2441_p5 }
 0x493   : > { %p2204_p13 = pneg %p2203_p12 }
 0x49a   : > { %v2198_v58 = vpop.eup %2197 }
 0x49b   : > { %v1187_v21 = vmul.f32 %v2198_v58, %v1185_v56 }
 0x49d   : > { %v1189_v4 = vsel %vm1188_vm12, %v1185_v56, %v1187_v21 }
 0x49e   : > { %v1192_v44 = vsel %vm1190_vm13, %v1191_v42, %v1189_v4 }
 0x49f   : > { %2028 = vpush %v1192_v44 }
 0x4c1   : > { %v1512_v22 = vpop.xlane.xlu1 %1511 }
 0x4c2   : > { %v1513_v23 = vrot.slane %v1512_v22, 4 }
 0x4c4   : > { %v1514_v9 = vadd.f32 %v1513_v23, %v1512_v22 }
 0x4c6   : > { %v1515_v17 = vrot.slane %v1514_v9, 2 }
 0x4c8   : > { %v1516_v49 = vadd.f32 %v1515_v17, %v1514_v9 }
 0x50a   : > { %v2016_v35 = vpop.f32.mrf.mxu1 }
 0x50b   : > { %v1421_v33 = vmul.f32 %v2016_v35, %v2883_v0 }
 0x50c   : > { %v1472_v7 = vpop.xlane.xlu0 %1471  ;;  %v1404_v25 = vpop.f32.mrf.mxu1 }
 0x50d   : > { %v1473_v6 = vrot.slane %v1472_v7, 4  ;;  %1863 = vst.msk [vmem:[%s2902_s23 + $0x30] sm:$0xff] %vm442_vm0, %v1421_v33  ;;  %v1419_v27 = vmul.f32 %v1404_v25, %v2890_v55  ;;  %v1517_v55 = vrot.slane %v1516_v49, 1 }
 0x50e   : > { %v2017_v29 = vpop.f32.mrf.mxu1 }
 0x50f   : > { %v1474_v45 = vadd.f32 %v1473_v6, %v1472_v7  ;;  %1861 = vst.msk [vmem:[%s2902_s23 + $0x20] sm:$0xff] %vm442_vm0, %v1419_v27  ;;  %v1422_v30 = vmul.f32 %v2017_v29, %v2898_v46  ;;  %v1518_v39 = vadd.f32 %v1517_v55, %v1516_v49 }
 0x510   : > { %v1549_v31 = vpop.xlane.xlu0 %1548  ;;  %v1407_v36 = vpop.f32.mrf.mxu1 }
 0x511   : > { %v1475_v0 = vrot.slane %v1474_v45, 2  ;;  %v1550_v32 = vrot.slane %v1549_v31, 4  ;;  %1864 = vst.msk [vmem:[%s2902_s23 + $0x38] sm:$0xff] %vm442_vm0, %v1422_v30  ;;  %v1420_v41 = vmul.f32 %v1407_v36, %v2910_v59 }
 0x513   : > { %v1551_v43 = vadd.f32 %v1550_v32, %v1549_v31  ;;  %v1476_v37 = vadd.f32 %v1475_v0, %v1474_v45  ;;  %1862 = vst.msk [vmem:[%s2902_s23 + $0x28] sm:$0xff] %vm442_vm0, %v1420_v41  ;;  %s2207_s23 = scalar_lea.vmem %s2206_s26, 2048 }
 0x514   : > { %p2209_p1 = scmp.lt.s32.totalorder %s2207_s23, %s2201_s2 }
 0x515   : > { %v1552_v47 = vrot.slane %v1551_v43, 2  ;;  %v1477_v48 = vrot.slane %v1476_v37, 1 }
 0x516   : > { %p2210_p2 = por %p2209_p1, %p2208_p0 }
 0x517   : > { %v1553_v46 = vadd.f32 %v1552_v47, %v1551_v43  ;;  %v1478_v40 = vadd.f32 %v1477_v48, %v1476_v37 }
 0x518   : > { %p2211_p3 = pnand %p2210_p2, %p2204_p13 }
 0x519   : > { %2030 = vpush %v1478_v40  ;;  %v1554_v13 = vrot.slane %v1553_v46, 1 }
 0x51a   : > { %2032 = vpush %v1518_v39 }
 0x51b   : > { %v1555_v50 = vadd.f32 %v1554_v13, %v1553_v46 }
 0x51d   : > { %2034 = vpush %v1555_v50 }
 0x51e   : > { %2214 = shalt.err (!%p2211_p3)
}
 0x51f   : > { %s2215_s10 = scalar_lea.hbm %s2966_s12, 1024  ;;  %s2219_s17 = scalar_lea.hbm %s3130_s6, 2048 }
 0x520   : > { %p2216_p4 = scmp.ne.s32.totalorder %s2966_s12, %s2215_s10  ;;  %p2220_p9 = scmp.lt.s32.totalorder %s2966_s12, %s3130_s6 }
 0x521   : > { %p2221_p10 = scmp.lt.s32.totalorder %s2219_s17, %s2215_s10 }
 0x522   : > { %p2217_p7 = pnand %p2216_p4, %p2441_p5 }
 0x523   : > { %p2222_p11 = por %p2221_p10, %p2220_p9 }
 0x524   : > { %p2218_p8 = pneg %p2217_p7 }
 0x526   : > { %p2223_p12 = pnand %p2222_p11, %p2218_p8 }
 0x528   : > { %2226 = shalt.err (!%p2223_p12)
}
 0x529   : > { %s3110_s2 = smov 128   ;;  %s2352_s26 = smov 8  }
 0x52a   : > { %2039 = dma.vmem_to_hbm [thread:$0]  (%p2441_p5), %s2969_s13, 1024, %s2966_s12, %s2976_s1, %s3110_s2, %s3110_s2, %s2352_s26  }
 0x52b   : > { %s1602_s3 = sshll.u32 %s2838_s22, 4  ;;  %s1576_s23 = scalar_lea.sflag [#allocation3], %s2832_s20  ;;  %s3003_s3 = int_to_ptr.vmem [resolvable:$true] %s1602_s3 }
 0x52c   : > { %s2227_s10 = scalar_lea.vmem %s3003_s3, 1024  ;;  %s2353_s19 = smov [#allocation2]  }
 0x52d   : > { %p2228_p13 = scmp.ne.s32.totalorder %s3003_s3, %s2227_s10  ;;  %s2231_s24 = sshll.u32 %s2353_s19, 4  ;;  %s2232_s24 = int_to_ptr.vmem [resolvable:$false] %s2231_s24 }
 0x52e   : > { %s2233_s17 = scalar_lea.vmem %s2232_s24, 2048  ;;  %p2234_p2 = scmp.lt.s32.totalorder %s3003_s3, %s2232_s24 }
 0x52f   : > { %p2229_p0 = pnand %p2228_p13, %p2441_p5  ;;  %p2235_p3 = scmp.lt.s32.totalorder %s2233_s17, %s2227_s10 }
 0x531   : > { %p2230_p1 = pneg %p2229_p0  ;;  %p2236_p4 = por %p2235_p3, %p2234_p2 }
 0x533   : > { %p2237_p7 = pnand %p2236_p4, %p2230_p1 }
 0x535   : > { %2240 = shalt.err (!%p2237_p7)
}
 0x536   : > { %s2241_s22 = scalar_lea.hbm %s2974_s0, 1024  ;;  %s2245_s25 = scalar_lea.hbm %s3131_s5, 2048 }
 0x537   : > { %p2242_p8 = scmp.ne.s32.totalorder %s2974_s0, %s2241_s22  ;;  %p2246_p11 = scmp.lt.s32.totalorder %s2974_s0, %s3131_s5 }
 0x538   : > { %p2247_p12 = scmp.lt.s32.totalorder %s2245_s25, %s2241_s22 }
 0x539   : > { %p2243_p9 = pnand %p2242_p8, %p2441_p5 }
 0x53a   : > { %p2248_p13 = por %p2247_p12, %p2246_p11 }
 0x53b   : > { %p2244_p10 = pneg %p2243_p9 }
 0x53d   : > { %p2249_p0 = pnand %p2248_p13, %p2244_p10 }
 0x53f   : > { %2252 = shalt.err (!%p2249_p0)
}
 0x540   : > { %s3132_s10 = smov 128   ;;  %s3029_s2 = spop %2028 }
 0x541   : > { %2038 = dma.vmem_to_hbm [thread:$0]  (%p2441_p5), %s3003_s3, 1024, %s2974_s0, %s1576_s23, %s3132_s10, %s3132_s10, %s2352_s26  }
 0x542   : > { %s1150_s12 = ssub.f32 0.0, %s2947_s18  ;;  %s1872_s6 = sshll.u32 %s2422_s9, 4 }
 0x543   : > { %s333_s29 = scalar_lea.vmem [#allocation6], %s2832_s20  ;;  %s1632_s23 = scalar_lea.hbm %s3107_s7, %s1872_s6 }
 0x544   : > { %s1151_s4 = smul.f32 %s2944_s21, %s1150_s12  ;;  %s1634_s28 = sshll.u32 %s333_s29, 4  ;;  %s1635_s28 = int_to_ptr.vmem [resolvable:$true] %s1634_s28 }
 0x545   : > { %s2253_s18 = scalar_lea.vmem %s1635_s28, 16  ;;  %s2354_s10 = smov [#allocation6]  }
 0x546   : > { %p2254_p1 = scmp.ne.s32.totalorder %s1635_s28, %s2253_s18 }
 0x548   : > { %p2255_p2 = pnand %p2254_p1, %p2441_p5 }
 0x54a   : > { %s2031_s24 = spop %2030  ;;  %p2256_p3 = pneg %p2255_p2 }
 0x54b   : > { %s2033_s17 = spop %2032 }
 0x54c   : > { %s1520_s22 = smul.f32 %s2033_s17, %s2944_s21 }
 0x54e   : > { %s1521_s13 = ssub.f32 %s2031_s24, %s1520_s22  ;;  %s2035_s25 = spop %2034 }
 0x54f   : > { %v1557_v59 = vstv %s2035_s25 }
 0x550   : > { %s1522_s19 = ssub.f32 0.0, %s1521_s13  ;;  %2199 = vrsqrt.f32 %v1557_v59 }
 0x552   : > { %s1523_s5 = smul.f32 %s2944_s21, %s1522_s19  ;;  %s2257_s21 = sshll.u32 %s2354_s10, 4  ;;  %s2258_s21 = int_to_ptr.vmem [resolvable:$false] %s2257_s21 }
 0x553   : > { %p2260_p4 = scmp.lt.s32.totalorder %s1635_s28, %s2258_s21 }
 0x554   : > { %s1524_s14 = sadd.f32 %s1523_s5, %s1151_s4  ;;  %s2259_s4 = scalar_lea.vmem %s2258_s21, 32 }
 0x555   : > { %p2261_p7 = scmp.lt.s32.totalorder %s2259_s4, %s2253_s18 }
 0x556   : > { %s1569_s0 = smul.f32 0.5, %s1524_s14 }
 0x557   : > { %p2262_p8 = por %p2261_p7, %p2260_p4 }
 0x558   : > { %v1570_v38 = vstv %s1569_s0 }
 0x559   : > { %1571 = vst [vmem:[%s333_s29] sm:$0x1] %v1570_v38  ;;  %p2263_p9 = pnand %p2262_p8, %p2256_p3 }
 0x55b   : > { %2266 = shalt.err (!%p2263_p9)
}
 0x55c   : > { %s2267_s5 = scalar_lea.hbm %s1632_s23, 16  ;;  %s2271_s24 = scalar_lea.hbm %s3107_s7, 32 }
 0x55d   : > { %p2268_p10 = scmp.ne.s32.totalorder %s1632_s23, %s2267_s5  ;;  %p2272_p13 = scmp.lt.s32.totalorder %s1632_s23, %s3107_s7 }
 0x55e   : > { %p2273_p0 = scmp.lt.s32.totalorder %s2271_s24, %s2267_s5 }
 0x55f   : > { %p2269_p11 = pnand %p2268_p10, %p2441_p5 }
 0x560   : > { %p2274_p1 = por %p2273_p0, %p2272_p13 }
 0x561   : > { %p2270_p12 = pneg %p2269_p11 }
 0x563   : > { %p2275_p2 = pnand %p2274_p1, %p2270_p12 }
 0x565   : > { %2278 = shalt.err (!%p2275_p2)
}
 0x566   : > { %2040 = dma.vmem_to_hbm [thread:$0]  (%p2441_p5), %s1635_s28, 16, %s1632_s23, %s2976_s1   ;;  %v2200_v28 = vpop.eup %2199  ;;  %vm1560_vm14 = vcmp.eq.f32.partialorder %v1557_v59, inf  ;;  %v1563_v57 = vand.u32 2147483648, %v1557_v59  ;;  %vm1562_vm15 = vcmp.eq.f32.partialorder %v1557_v59, 0.0 }
 0x567   : > { %v1559_v51 = vmul.f32 %v2200_v28, %v1557_v59  ;;  %s1194_s12 = smul.f32 0.088388346, %s3029_s2  ;;  %s339_s3 = scalar_lea.vmem [#allocation7], %s2832_s20 }
 0x568   : > { %s1647_s18 = sshll.u32 %s339_s3, 4  ;;  %s3062_s10 = scalar_lea.hbm %s3108_s8, %s1872_s6  ;;  %s1648_s18 = int_to_ptr.vmem [resolvable:$true] %s1647_s18 }
 0x569   : > { %v1561_v61 = vsel %vm1560_vm14, %v1557_v59, %v1559_v51  ;;  %s1846_s19 = sadd.f32 -1.0, %s1194_s12  ;;  %s1590_s21 = scalar_lea.sflag [#allocation8], %s2832_s20 }
 0x56a   : > { %v1564_v63 = vsel %vm1562_vm15, %v1563_v57, %v1561_v61  ;;  %s2279_s2 = scalar_lea.vmem %s1648_s18, 16  ;;  %s2355_s4 = smov [#allocation7]  }
 0x56b   : > { %2036 = vpush %v1564_v63  ;;  %p2280_p3 = scmp.ne.s32.totalorder %s1648_s18, %s2279_s2  ;;  %s2283_s5 = sshll.u32 %s2355_s4, 4  ;;  %s2284_s5 = int_to_ptr.vmem [resolvable:$false] %s2283_s5 }
 0x56c   : > { %s2285_s29 = scalar_lea.vmem %s2284_s5, 32  ;;  %p2286_p8 = scmp.lt.s32.totalorder %s1648_s18, %s2284_s5 }
 0x56d   : > { %p2281_p4 = pnand %p2280_p3, %p2441_p5  ;;  %p2287_p9 = scmp.lt.s32.totalorder %s2285_s29, %s2279_s2 }
 0x56f   : > { %p2282_p7 = pneg %p2281_p4  ;;  %p2288_p10 = por %p2287_p9, %p2286_p8 }
 0x571   : > { %p2289_p11 = pnand %p2288_p10, %p2282_p7 }
 0x59c   : > { %s2037_s13 = spop %2036 }
 0x59d   : > { %s1566_s25 = smul.f32 0.088388346, %s2037_s13 }
 0x59f   : > { %s1865_s0 = sadd.f32 -1.0, %s1566_s25 }
 0x5a1   : > { %s1568_s26 = sadd.f32 %s1865_s0, %s1846_s19 }
 0x5a3   : > { %s1572_s1 = smul.f32 0.5, %s1568_s26 }
 0x5a5   : > { %v1573_v52 = vstv %s1572_s1 }
 0x5a6   : > { %1574 = vst [vmem:[%s339_s3] sm:$0x1] %v1573_v52 }
 0x5a7   : > { %2292 = shalt.err (!%p2289_p11)
}
 0x5a8   : > { %s2293_s6 = scalar_lea.hbm %s3062_s10, 16  ;;  %s2297_s14 = scalar_lea.hbm %s3108_s8, 32 }
 0x5a9   : > { %p2294_p12 = scmp.ne.s32.totalorder %s3062_s10, %s2293_s6  ;;  %p2298_p1 = scmp.lt.s32.totalorder %s3062_s10, %s3108_s8 }
 0x5aa   : > { %p2299_p2 = scmp.lt.s32.totalorder %s2297_s14, %s2293_s6 }
 0x5ab   : > { %p2295_p13 = pnand %p2294_p12, %p2441_p5 }
 0x5ac   : > { %p2300_p3 = por %p2299_p2, %p2298_p1 }
 0x5ad   : > { %p2296_p0 = pneg %p2295_p13 }
 0x5af   : > { %p2301_p4 = pnand %p2300_p3, %p2296_p0 }
 0x5b1   : > { %2304 = shalt.err (!%p2301_p4)
}
 0x5b2   : > { %2041 = dma.vmem_to_hbm [thread:$0]  (%p2441_p5), %s1648_s18, 16, %s3062_s10, %s1590_s21  }
 0x5b3 PF: > { %p2059_p7 = scmp.ge.s32.totalorder %s2347_s30, 2  ;;  %s1659_s22 = sand.u32 1, %s2335_s27  }
 0x5b4   : > { %s1660_s12 = scalar_lea.sflag [#allocation3], %s1659_s22 }
 0x5b5   : > { %p2047_p8 = pnand %p2059_p7, %p2445_p6 }
 0x5b7   : > { %p2048_p9 = pneg %p2047_p8 }
 0x5b9   : > { %2322 = dma.done.wait (%p2048_p9), %s1660_s12, 1024  }
 0x5ba   : > { %2324 = vsyncadd (%p2048_p9), %s1660_s12, 4294966272  ;;  %s3133_s13 = sadd.s32 4294967294, %s2347_s30  }
 0x5bb   : > { %s1668_s25 = sand.u32 1, %s3133_s13  }
 0x5bc   : > { %s1669_s19 = scalar_lea.sflag [#allocation5], %s1668_s25 }
 0x5bd   : > { %2326 = dma.done.wait (%p2048_p9), %s1669_s19, 1040  }
 0x5be   : > { %2328 = vsyncadd (%p2048_p9), %s1669_s19, 4294966256  ;;  %s1686_s15 = scalar_lea.sflag [#allocation8], %s1659_s22 }
 0x5bf   : > { %2330 = dma.done.wait (%p2048_p9), %s1686_s15, 16  }
 0x5c0   : > { %2332 = vsyncadd (%p2048_p9), %s1686_s15, 4294967280  ;;  %s3134_s27 = sld [smem:[#allocation12_spill]]  ;;  %p25_p5 = scmp.ge.s32.totalorder %s2426_s11, 4  }
 0x5c1   : > { %s3135_s28 = sld [smem:[#allocation13_spill]]  ;;  %s3137_s30 = smov %s2426_s11 }
 0x5c2   : > { %s3136_s29 = sld [smem:[#allocation14_spill]]  ;;  %27 = sbr.rel (!%p25_p5) target bundleno = 15 (0xf), region = 129 }
 0x5c7   :  { %1690 = vsyncpa [#allocation3], 1 }
 0x5c8   :  { %1692 = vsyncpa [#allocation3 + $0x1], 1 }
 0x5c9   :  { %1693 = vsyncpa [#allocation5], 1 }
 0x5ca   :  { %1695 = vsyncpa [#allocation5 + $0x1], 1 }
 0x5cb   :  { %1696 = vsyncpa [#allocation8], 1 }
 0x5cc   :  { %1698 = vsyncpa [#allocation8 + $0x1], 1 }

</bundles_post_ra>
